<compile_context>
chip_gen: v7x
topology: tpu7x:2x2x1
jax: 0.10.0
libtpu: 0.0.40
codegen_flags: <defaults>
</compile_context>

<pallas_src>
import math
import functools

import numpy as np
import jax
import jax.numpy as jnp
from jax.experimental import pallas as pl
from jax.experimental.pallas import tpu as pltpu


# ----------------------------------------------------------------------------
# Small helpers
# ----------------------------------------------------------------------------

def _gelu(x):
    return jax.nn.gelu(x, approximate=True)


def _layernorm(x, gamma, beta, eps=1e-5):
    mean = jnp.mean(x, axis=-1, keepdims=True)
    var = jnp.mean((x - mean) ** 2, axis=-1, keepdims=True)
    return (x - mean) * jax.lax.rsqrt(var + eps) * gamma + beta


class CoarseSpan:
    """Minimal synthetic stand-in for ltron's coarse_span object."""

    def __init__(self, shapes):
        self.shapes = dict(shapes)
        self.ranges = {}
        start = 0
        for name, shp in self.shapes.items():
            tot = 1
            for s in shp:
                tot *= s
            self.ranges[name] = (start, start + tot)
            start += tot
        self.total = start

    def keys(self):
        return self.shapes.keys()

    def name_range(self, name):
        return self.ranges[name]

    def get_shape(self, name):
        return self.shapes[name]


# ----------------------------------------------------------------------------
# Fused kernel
# ----------------------------------------------------------------------------

def _fused_kernel(x_ref, w_ref, b_ref, emb_ref, cst_ref, out_ref, *, c, n, f, k):
    sb = x_ref.shape[0]
    W = out_ref.shape[1]
    log_f = math.log(float(f))
    o1 = 2 * c + 1                      # width of the fused first-layer weight

    # ---- static slices out of the packed slabs ----
    w = w_ref[...]
    w1 = w[:, :o1]                                           # [cw1 | fw1x | no_w]
    cw2 = w[:, o1:o1 + c]
    cw3 = w[:, o1 + c:o1 + c + n]
    fw1e = w[:, o1 + c + n:o1 + 2 * c + n]
    fw2 = w[:, o1 + 2 * c + n:o1 + 3 * c + n]
    fw3 = w[:, o1 + 3 * c + n:o1 + 3 * c + n + f]

    b = b_ref[...]
    in_g = b[0:1, :c]
    in_b = b[1:2, :c]
    b1 = b[2:3, :o1]                                         # [cb1 | fb1 | no_b]
    cb2 = b[3:4, :c]
    cb3 = b[4:5, :n]
    e_g = b[5:6, :c]
    e_b = b[6:7, :c]
    fb2 = b[7:8, :c]
    fb3 = b[8:9, :f]

    cst = cst_ref[...]
    ec = cst[:n, :]                                          # (n, W) 0/1, final-order
    et = cst[n:n + f, :]                                     # (f, W) 0/1, final-order
    col_coarse = cst[n + f:n + f + 1, :]                     # (1, W) float, -1 = unowned

    # ---- input LayerNorm ----
    xn = _layernorm(x_ref[...], in_g, in_b)

    # ---- fused first layer: coarse layer 1 | fine x-half | no_op head (1 dot) ----
    h1 = jnp.dot(xn, w1, preferred_element_type=jnp.float32) + b1   # (sb, 2c+1)
    hc = _gelu(h1[:, :c])
    hx = h1[:, c:2 * c]                                      # xn @ fw1x + fb1 (pre-act)
    noop = h1[:, 2 * c:2 * c + 1]                            # (sb, 1)

    # ---- rest of the coarse head ----
    hc = _gelu(jnp.dot(hc, cw2, preferred_element_type=jnp.float32) + cb2)
    coarse = jnp.dot(hc, cw3, preferred_element_type=jnp.float32) + cb3   # (sb, n)

    # ---- base logits, already in the FINAL output column order ----
    owned = col_coarse >= 0.0                                # (1, W) bool
    base = jnp.dot(coarse, ec, preferred_element_type=jnp.float32)        # (sb, W)
    out = jnp.where(owned, base - log_f, 0.0)
    noop_col = jax.lax.broadcasted_iota(jnp.int32, (1, W), 1) == 0
    out = jnp.where(noop_col, noop, out)                     # no_op logit at column 0

    # ---- top-k selection (iterated argmax + mask; k tiny and static) ----
    iota_n = jax.lax.broadcasted_iota(jnp.int32, (sb, n), 1).astype(jnp.float32)
    work = coarse
    idxs, onehots = [], []
    for _ in range(k):
        m = jnp.max(work, axis=-1, keepdims=True)
        idx = jnp.min(jnp.where(work == m, iota_n, float(n)),
                      axis=-1, keepdims=True)                # lowest index among ties
        sel = iota_n == idx
        idxs.append(idx)
        onehots.append(sel.astype(jnp.float32))
        work = jnp.where(sel, -jnp.inf, work)

    # ---- fine head batched over all k selections (one matmul chain) ----
    oh = jnp.concatenate(onehots, axis=0)                    # (k*sb, n)
    e = jnp.dot(oh, emb_ref[...], preferred_element_type=jnp.float32)
    e = _layernorm(e, e_g, e_b)                              # (k*sb, c)
    hx_rep = jnp.concatenate([hx] * k, axis=0)               # (k*sb, c)
    g = _gelu(hx_rep + jnp.dot(e, fw1e, preferred_element_type=jnp.float32))
    g = _gelu(jnp.dot(g, fw2, preferred_element_type=jnp.float32) + fb2)
    fine = jnp.dot(g, fw3, preferred_element_type=jnp.float32) + fb3      # (k*sb, f)

    # stable log-softmax over the fine dim, then expand to the final layout
    mx = jnp.max(fine, axis=-1, keepdims=True)
    lse = mx + jnp.log(jnp.sum(jnp.exp(fine - mx), axis=-1, keepdims=True))
    payload = jnp.dot(fine - lse + log_f, et,
                      preferred_element_type=jnp.float32)    # (k*sb, W)

    # ---- masked scatter-add into the selected coarse blocks (top-k distinct) ----
    for kk in range(k):
        mask = col_coarse == idxs[kk]                        # (sb, W) via broadcast
        out = out + jnp.where(mask, payload[kk * sb:(kk + 1) * sb, :], 0.0)

    out_ref[...] = out


# ----------------------------------------------------------------------------
# Constant expansion matrices in the FINAL output column order
# ----------------------------------------------------------------------------

def build_constants(coarse_span, fine_shape, pad_w):
    n = coarse_span.total
    f = 1
    for s in fine_shape:
        f *= s
    # col_src[col] = coarse*f + fine feeding that output column, -1 if unowned
    col_src = np.full((pad_w,), -1, dtype=np.int64)
    col = 1                                                  # column 0 = no_op logit
    for name in coarse_span.keys():
        start, stop = coarse_span.name_range(name)
        c_shape = coarse_span.get_shape(name)
        nc = stop - start
        src = (np.arange(start, stop, dtype=np.int64).reshape(-1, 1) * f
               + np.arange(f, dtype=np.int64).reshape(1, -1))
        src = src.reshape(*c_shape, *fine_shape)
        if len(c_shape) > 1:                                 # interleaved permute
            assert len(fine_shape) >= len(c_shape)
            perm = []
            for i in range(len(c_shape)):
                perm.append(i)
                perm.append(i + len(c_shape))
            for _ in range(len(fine_shape) - len(c_shape)):
                perm.append(perm[-1] + 1)
            src = np.transpose(src, perm)
        src = src.reshape(-1)
        col_src[col:col + nc * f] = src
        col += nc * f
    owned = col_src >= 0
    col_coarse = np.where(owned, col_src // f, -1)
    col_fine = np.where(owned, col_src % f, -1)
    e_coarse = (col_coarse[None, :] == np.arange(n)[:, None]).astype(np.float32)
    e_tile = (col_fine[None, :] == np.arange(f)[:, None]).astype(np.float32)
    cst = np.concatenate(
        [e_coarse, e_tile, col_coarse.astype(np.float32)[None, :]], axis=0)
    return jnp.asarray(cst)                                  # (n + f + 1, pad_w)


# ----------------------------------------------------------------------------
# Parameter construction (deterministic, synthetic) + host-side slab packing
# ----------------------------------------------------------------------------

def init_params(key, channels, coarse_total, fine_total):
    ks = jax.random.split(key, 16)
    s = 0.02

    def lin(k, fan_in, fan_out):
        kw, kb = jax.random.split(k)
        w = jax.random.normal(kw, (fan_in, fan_out), jnp.float32) * s
        b = jax.random.normal(kb, (1, fan_out), jnp.float32) * s
        return w, b

    p = {}
    p['in_g'] = jnp.ones((1, channels), jnp.float32)
    p['in_b'] = jnp.zeros((1, channels), jnp.float32)
    p['no_w'], p['no_b'] = lin(ks[0], channels, 1)
    p['cw1'], p['cb1'] = lin(ks[1], channels, channels)
    p['cw2'], p['cb2'] = lin(ks[2], channels, channels)
    p['cw3'], p['cb3'] = lin(ks[3], channels, coarse_total)
    p['emb'] = jax.random.normal(ks[4], (coarse_total, channels), jnp.float32) * s
    p['e_g'] = jnp.ones((1, channels), jnp.float32)
    p['e_b'] = jnp.zeros((1, channels), jnp.float32)
    p['fw1'], p['fb1'] = lin(ks[5], 2 * channels, channels)
    p['fw2'], p['fb2'] = lin(ks[6], channels, channels)
    p['fw3'], p['fb3'] = lin(ks[7], channels, fine_total)
    return p


def pack_params(params, channels, coarse_span, fine_shape):
    """One-time host-side packing into 4 slabs (4 DMAs instead of ~22)."""
    c = channels
    n = coarse_span.total
    f = 1
    for s in fine_shape:
        f *= s
    assert 2 * c + 1 <= 128 and n <= 128 and f <= 128

    fw1x = params['fw1'][:c]          # x half of the fine head's first layer
    fw1e = params['fw1'][c:]          # embedding half
    w_slab = jnp.concatenate(
        [params['cw1'], fw1x, params['no_w'],          # fused first layer (c, 2c+1)
         params['cw2'], params['cw3'],
         fw1e, params['fw2'], params['fw3']], axis=1)  # (c, 3c + n + f + (2c+1))

    BW = 128

    def row(v):
        v = v.reshape(1, -1)
        return jnp.pad(v, ((0, 0), (0, BW - v.shape[1])))

    b1 = jnp.concatenate([params['cb1'], params['fb1'], params['no_b']], axis=1)
    b_slab = jnp.concatenate(
        [row(params['in_g']), row(params['in_b']), row(b1),
         row(params['cb2']), row(params['cb3']),
         row(params['e_g']), row(params['e_b']),
         row(params['fb2']), row(params['fb3'])], axis=0)    # (9, 128)

    out_width = 1 + n * f
    pad_w = ((out_width + 127) // 128) * 128                 # lane-dense, full vst rows
    cst = build_constants(coarse_span, fine_shape, pad_w)

    return {'w': w_slab, 'b': b_slab, 'emb': params['emb'], 'cst': cst}


# ----------------------------------------------------------------------------
# Forward wrapper
# ----------------------------------------------------------------------------

_VMEM = pl.BlockSpec(memory_space=pltpu.MemorySpace.VMEM)


def cursor_decoder_forward(slabs, x, coarse_span, fine_shape, sample_mode='top4'):
    assert sample_mode in ('max', 'top4')
    k = 1 if sample_mode == 'max' else 4
    sb, c = x.shape
    n = coarse_span.total
    f = 1
    for s in fine_shape:
        f *= s
    out_width = 1 + n * f
    pad_w = slabs['cst'].shape[1]

    out = pl.pallas_call(
        functools.partial(_fused_kernel, c=c, n=n, f=f, k=k),
        out_shape=jax.ShapeDtypeStruct((sb, pad_w), jnp.float32),
        in_specs=[_VMEM] * 5,
        out_specs=_VMEM,
    )(x, slabs['w'], slabs['b'], slabs['emb'], slabs['cst'])

    # The no_op column, per-span permutation, flatten and concat are already
    # baked into the kernel's output column order; just drop the 128-pad tail.
    return out[:, :out_width]


# ----------------------------------------------------------------------------
# main
# ----------------------------------------------------------------------------

if __name__ == '__main__':
    key = jax.random.PRNGKey(0)
    k_param, k_x = jax.random.split(key)

    channels = 32
    sb = 8
    coarse_span = CoarseSpan({'table': (4, 4), 'hand': (2, 2)})   # total = 20
    fine_shape = (4, 4)                                           # fine_total = 16
    fine_total = 16

    params = init_params(k_param, channels, coarse_span.total, fine_total)
    slabs = pack_params(params, channels, coarse_span, fine_shape)
    x = jax.random.normal(k_x, (sb, channels), jnp.float32)

    @jax.jit
    def run(s, xx):
        return cursor_decoder_forward(s, xx, coarse_span, fine_shape,
                                      sample_mode='top4')

    out = jax.block_until_ready(run(slabs, x))

    # expected output width: 1 (no_op) + 16*16 (table) + 4*16 (hand) = 321
    assert out.shape == (sb, 1 + 20 * fine_total), out.shape
    assert bool(jnp.all(jnp.isfinite(out)))
    print("KERNEL_OK")
</pallas_src>

<mosaic_0001>
module attributes {stable_mosaic.version = 11 : i64} {
  func.func @_fused_kernel(%arg0: memref<8x32xf32, #tpu.memory_space<vmem>>, %arg1: memref<32x197xf32, #tpu.memory_space<vmem>>, %arg2: memref<9x128xf32, #tpu.memory_space<vmem>>, %arg3: memref<20x32xf32, #tpu.memory_space<vmem>>, %arg4: memref<37x384xf32, #tpu.memory_space<vmem>>, %arg5: memref<8x384xf32, #tpu.memory_space<vmem>>) attributes {dimension_semantics = [], scalar_prefetch = 0 : i64, scratch_operands = 0 : i64, tpu.core_type = #tpu.core_type<tc>} {
    %c0 = arith.constant 0 : index
    %c0_0 = arith.constant 0 : index
    %0 = vector.load %arg1[%c0, %c0_0] : memref<32x197xf32, #tpu.memory_space<vmem>>, vector<32x197xf32>
    %1 = vector.extract_strided_slice %0 {offsets = [0, 0], sizes = [32, 65], strides = [1, 1]} : vector<32x197xf32> to vector<32x65xf32>
    %2 = vector.extract_strided_slice %0 {offsets = [0, 65], sizes = [32, 32], strides = [1, 1]} : vector<32x197xf32> to vector<32x32xf32>
    %3 = vector.extract_strided_slice %0 {offsets = [0, 97], sizes = [32, 20], strides = [1, 1]} : vector<32x197xf32> to vector<32x20xf32>
    %4 = vector.extract_strided_slice %0 {offsets = [0, 117], sizes = [32, 32], strides = [1, 1]} : vector<32x197xf32> to vector<32x32xf32>
    %5 = vector.extract_strided_slice %0 {offsets = [0, 149], sizes = [32, 32], strides = [1, 1]} : vector<32x197xf32> to vector<32x32xf32>
    %6 = vector.extract_strided_slice %0 {offsets = [0, 181], sizes = [32, 16], strides = [1, 1]} : vector<32x197xf32> to vector<32x16xf32>
    %c0_1 = arith.constant 0 : index
    %c0_2 = arith.constant 0 : index
    %7 = vector.load %arg2[%c0_1, %c0_2] : memref<9x128xf32, #tpu.memory_space<vmem>>, vector<9x128xf32>
    %8 = vector.extract_strided_slice %7 {offsets = [0, 0], sizes = [1, 32], strides = [1, 1]} : vector<9x128xf32> to vector<1x32xf32>
    %9 = vector.extract_strided_slice %7 {offsets = [1, 0], sizes = [1, 32], strides = [1, 1]} : vector<9x128xf32> to vector<1x32xf32>
    %10 = vector.extract_strided_slice %7 {offsets = [2, 0], sizes = [1, 65], strides = [1, 1]} : vector<9x128xf32> to vector<1x65xf32>
    %11 = vector.extract_strided_slice %7 {offsets = [3, 0], sizes = [1, 32], strides = [1, 1]} : vector<9x128xf32> to vector<1x32xf32>
    %12 = vector.extract_strided_slice %7 {offsets = [4, 0], sizes = [1, 20], strides = [1, 1]} : vector<9x128xf32> to vector<1x20xf32>
    %13 = vector.extract_strided_slice %7 {offsets = [5, 0], sizes = [1, 32], strides = [1, 1]} : vector<9x128xf32> to vector<1x32xf32>
    %14 = vector.extract_strided_slice %7 {offsets = [6, 0], sizes = [1, 32], strides = [1, 1]} : vector<9x128xf32> to vector<1x32xf32>
    %15 = vector.extract_strided_slice %7 {offsets = [7, 0], sizes = [1, 32], strides = [1, 1]} : vector<9x128xf32> to vector<1x32xf32>
    %16 = vector.extract_strided_slice %7 {offsets = [8, 0], sizes = [1, 16], strides = [1, 1]} : vector<9x128xf32> to vector<1x16xf32>
    %c0_3 = arith.constant 0 : index
    %c0_4 = arith.constant 0 : index
    %17 = vector.load %arg4[%c0_3, %c0_4] : memref<37x384xf32, #tpu.memory_space<vmem>>, vector<37x384xf32>
    %18 = vector.extract_strided_slice %17 {offsets = [0, 0], sizes = [20, 384], strides = [1, 1]} : vector<37x384xf32> to vector<20x384xf32>
    %19 = vector.extract_strided_slice %17 {offsets = [20, 0], sizes = [16, 384], strides = [1, 1]} : vector<37x384xf32> to vector<16x384xf32>
    %20 = vector.extract_strided_slice %17 {offsets = [36, 0], sizes = [1, 384], strides = [1, 1]} : vector<37x384xf32> to vector<1x384xf32>
    %c0_5 = arith.constant 0 : index
    %c0_6 = arith.constant 0 : index
    %21 = vector.load %arg0[%c0_5, %c0_6] : memref<8x32xf32, #tpu.memory_space<vmem>>, vector<8x32xf32>
    %cst = arith.constant dense<0.000000e+00> : vector<8xf32>
    %22 = vector.multi_reduction <add>, %21, %cst [1] : vector<8x32xf32> to vector<8xf32>
    %23 = vector.shape_cast %22 : vector<8xf32> to vector<8x1xf32>
    %cst_7 = arith.constant 3.200000e+01 : f32
    %24 = vector.broadcast %cst_7 : f32 to vector<8x1xf32>
    %25 = arith.divf %23, %24 : vector<8x1xf32>
    %26 = vector.broadcast %25 : vector<8x1xf32> to vector<8x32xf32>
    %27 = arith.subf %21, %26 : vector<8x32xf32>
    %28 = arith.mulf %27, %27 : vector<8x32xf32>
    %cst_8 = arith.constant dense<0.000000e+00> : vector<8xf32>
    %29 = vector.multi_reduction <add>, %28, %cst_8 [1] : vector<8x32xf32> to vector<8xf32>
    %30 = vector.shape_cast %29 : vector<8xf32> to vector<8x1xf32>
    %cst_9 = arith.constant 3.200000e+01 : f32
    %31 = vector.broadcast %cst_9 : f32 to vector<8x1xf32>
    %32 = arith.divf %30, %31 : vector<8x1xf32>
    %33 = vector.broadcast %25 : vector<8x1xf32> to vector<8x32xf32>
    %34 = arith.subf %21, %33 : vector<8x32xf32>
    %cst_10 = arith.constant 9.99999974E-6 : f32
    %35 = vector.broadcast %cst_10 : f32 to vector<8x1xf32>
    %36 = arith.addf %32, %35 : vector<8x1xf32>
    %37 = math.rsqrt %36 : vector<8x1xf32>
    %38 = vector.broadcast %37 : vector<8x1xf32> to vector<8x32xf32>
    %39 = arith.mulf %34, %38 : vector<8x32xf32>
    %40 = vector.broadcast %8 : vector<1x32xf32> to vector<8x32xf32>
    %41 = arith.mulf %39, %40 : vector<8x32xf32>
    %42 = vector.broadcast %9 : vector<1x32xf32> to vector<8x32xf32>
    %43 = arith.addf %41, %42 : vector<8x32xf32>
    %cst_11 = arith.constant dense<0.000000e+00> : vector<8x65xf32>
    %44 = tpu.matmul %43, %1, %cst_11 {dimension_numbers = #tpu.dot_dimension_numbers<[1], [0], [0], [1], [0, 0, 1, 1], [], []>} : vector<8x32xf32>, vector<32x65xf32>, vector<8x65xf32> -> vector<8x65xf32>
    %45 = vector.broadcast %10 : vector<1x65xf32> to vector<8x65xf32>
    %46 = arith.addf %44, %45 : vector<8x65xf32>
    %47 = vector.extract_strided_slice %46 {offsets = [0, 0], sizes = [8, 32], strides = [1, 1]} : vector<8x65xf32> to vector<8x32xf32>
    %48 = arith.mulf %47, %47 : vector<8x32xf32>
    %49 = arith.mulf %47, %48 : vector<8x32xf32>
    %cst_12 = arith.constant 4.471500e-02 : f32
    %50 = vector.broadcast %cst_12 : f32 to vector<8x32xf32>
    %51 = arith.mulf %50, %49 : vector<8x32xf32>
    %52 = arith.addf %47, %51 : vector<8x32xf32>
    %cst_13 = arith.constant 0.797884583 : f32
    %53 = vector.broadcast %cst_13 : f32 to vector<8x32xf32>
    %54 = arith.mulf %53, %52 : vector<8x32xf32>
    %55 = math.tanh %54 : vector<8x32xf32>
    %cst_14 = arith.constant 1.000000e+00 : f32
    %56 = vector.broadcast %cst_14 : f32 to vector<8x32xf32>
    %57 = arith.addf %56, %55 : vector<8x32xf32>
    %cst_15 = arith.constant 5.000000e-01 : f32
    %58 = vector.broadcast %cst_15 : f32 to vector<8x32xf32>
    %59 = arith.mulf %58, %57 : vector<8x32xf32>
    %60 = arith.mulf %47, %59 : vector<8x32xf32>
    %61 = vector.extract_strided_slice %46 {offsets = [0, 32], sizes = [8, 32], strides = [1, 1]} : vector<8x65xf32> to vector<8x32xf32>
    %62 = vector.extract_strided_slice %46 {offsets = [0, 64], sizes = [8, 1], strides = [1, 1]} : vector<8x65xf32> to vector<8x1xf32>
    %cst_16 = arith.constant dense<0.000000e+00> : vector<8x32xf32>
    %63 = tpu.matmul %60, %2, %cst_16 {dimension_numbers = #tpu.dot_dimension_numbers<[1], [0], [0], [1], [0, 0, 1, 1], [], []>} : vector<8x32xf32>, vector<32x32xf32>, vector<8x32xf32> -> vector<8x32xf32>
    %64 = vector.broadcast %11 : vector<1x32xf32> to vector<8x32xf32>
    %65 = arith.addf %63, %64 : vector<8x32xf32>
    %66 = arith.mulf %65, %65 : vector<8x32xf32>
    %67 = arith.mulf %65, %66 : vector<8x32xf32>
    %cst_17 = arith.constant 4.471500e-02 : f32
    %68 = vector.broadcast %cst_17 : f32 to vector<8x32xf32>
    %69 = arith.mulf %68, %67 : vector<8x32xf32>
    %70 = arith.addf %65, %69 : vector<8x32xf32>
    %cst_18 = arith.constant 0.797884583 : f32
    %71 = vector.broadcast %cst_18 : f32 to vector<8x32xf32>
    %72 = arith.mulf %71, %70 : vector<8x32xf32>
    %73 = math.tanh %72 : vector<8x32xf32>
    %cst_19 = arith.constant 1.000000e+00 : f32
    %74 = vector.broadcast %cst_19 : f32 to vector<8x32xf32>
    %75 = arith.addf %74, %73 : vector<8x32xf32>
    %cst_20 = arith.constant 5.000000e-01 : f32
    %76 = vector.broadcast %cst_20 : f32 to vector<8x32xf32>
    %77 = arith.mulf %76, %75 : vector<8x32xf32>
    %78 = arith.mulf %65, %77 : vector<8x32xf32>
    %cst_21 = arith.constant dense<0.000000e+00> : vector<8x20xf32>
    %79 = tpu.matmul %78, %3, %cst_21 {dimension_numbers = #tpu.dot_dimension_numbers<[1], [0], [0], [1], [0, 0, 1, 1], [], []>} : vector<8x32xf32>, vector<32x20xf32>, vector<8x20xf32> -> vector<8x20xf32>
    %80 = vector.broadcast %12 : vector<1x20xf32> to vector<8x20xf32>
    %81 = arith.addf %79, %80 : vector<8x20xf32>
    %cst_22 = arith.constant 0.000000e+00 : f32
    %82 = vector.broadcast %cst_22 : f32 to vector<1x384xf32>
    %83 = arith.cmpf oge, %20, %82 : vector<1x384xf32>
    %cst_23 = arith.constant dense<0.000000e+00> : vector<8x384xf32>
    %84 = tpu.matmul %81, %18, %cst_23 {dimension_numbers = #tpu.dot_dimension_numbers<[1], [0], [0], [1], [0, 0, 1, 1], [], []>} : vector<8x20xf32>, vector<20x384xf32>, vector<8x384xf32> -> vector<8x384xf32>
    %cst_24 = arith.constant 2.77258873 : f32
    %85 = vector.broadcast %cst_24 : f32 to vector<8x384xf32>
    %86 = arith.subf %84, %85 : vector<8x384xf32>
    %cst_25 = arith.constant 0.000000e+00 : f32
    %87 = vector.shape_cast %83 : vector<1x384xi1> to vector<1x384xi1>
    %88 = vector.broadcast %87 : vector<1x384xi1> to vector<8x384xi1>
    %89 = vector.broadcast %cst_25 : f32 to vector<8x384xf32>
    %90 = arith.select %88, %86, %89 : vector<8x384xi1>, vector<8x384xf32>
    %91 = tpu.iota {dimensions = array<i32: 1>} : vector<1x384xi32>
    %c0_i32 = arith.constant 0 : i32
    %92 = vector.broadcast %c0_i32 : i32 to vector<1x384xi32>
    %93 = arith.cmpi eq, %91, %92 : vector<1x384xi32>
    %94 = vector.shape_cast %93 : vector<1x384xi1> to vector<1x384xi1>
    %95 = vector.broadcast %94 : vector<1x384xi1> to vector<8x384xi1>
    %96 = vector.shape_cast %62 : vector<8x1xf32> to vector<8x1xf32>
    %97 = vector.broadcast %96 : vector<8x1xf32> to vector<8x384xf32>
    %98 = arith.select %95, %97, %90 : vector<8x384xi1>, vector<8x384xf32>
    %99 = tpu.iota {dimensions = array<i32: 1>} : vector<8x20xi32>
    %100 = arith.sitofp %99 : vector<8x20xi32> to vector<8x20xf32>
    %cst_26 = arith.constant dense<0xFF800000> : vector<8xf32>
    %101 = vector.multi_reduction <maximumf>, %81, %cst_26 [1] : vector<8x20xf32> to vector<8xf32>
    %102 = vector.shape_cast %101 : vector<8xf32> to vector<8x1xf32>
    %103 = vector.broadcast %102 : vector<8x1xf32> to vector<8x20xf32>
    %104 = arith.cmpf oeq, %81, %103 : vector<8x20xf32>
    %cst_27 = arith.constant 2.000000e+01 : f32
    %105 = vector.broadcast %cst_27 : f32 to vector<8x20xf32>
    %106 = arith.select %104, %100, %105 : vector<8x20xi1>, vector<8x20xf32>
    %cst_28 = arith.constant dense<0x7F800000> : vector<8xf32>
    %107 = vector.multi_reduction <minimumf>, %106, %cst_28 [1] : vector<8x20xf32> to vector<8xf32>
    %108 = vector.shape_cast %107 : vector<8xf32> to vector<8x1xf32>
    %109 = vector.broadcast %108 : vector<8x1xf32> to vector<8x20xf32>
    %110 = arith.cmpf oeq, %100, %109 : vector<8x20xf32>
    %111 = arith.extui %110 : vector<8x20xi1> to vector<8x20xi32>
    %112 = arith.sitofp %111 : vector<8x20xi32> to vector<8x20xf32>
    %cst_29 = arith.constant 0xFF800000 : f32
    %113 = vector.broadcast %cst_29 : f32 to vector<8x20xf32>
    %114 = arith.select %110, %113, %81 : vector<8x20xi1>, vector<8x20xf32>
    %cst_30 = arith.constant dense<0xFF800000> : vector<8xf32>
    %115 = vector.multi_reduction <maximumf>, %114, %cst_30 [1] : vector<8x20xf32> to vector<8xf32>
    %116 = vector.shape_cast %115 : vector<8xf32> to vector<8x1xf32>
    %117 = vector.broadcast %116 : vector<8x1xf32> to vector<8x20xf32>
    %118 = arith.cmpf oeq, %114, %117 : vector<8x20xf32>
    %cst_31 = arith.constant 2.000000e+01 : f32
    %119 = vector.broadcast %cst_31 : f32 to vector<8x20xf32>
    %120 = arith.select %118, %100, %119 : vector<8x20xi1>, vector<8x20xf32>
    %cst_32 = arith.constant dense<0x7F800000> : vector<8xf32>
    %121 = vector.multi_reduction <minimumf>, %120, %cst_32 [1] : vector<8x20xf32> to vector<8xf32>
    %122 = vector.shape_cast %121 : vector<8xf32> to vector<8x1xf32>
    %123 = vector.broadcast %122 : vector<8x1xf32> to vector<8x20xf32>
    %124 = arith.cmpf oeq, %100, %123 : vector<8x20xf32>
    %125 = arith.extui %124 : vector<8x20xi1> to vector<8x20xi32>
    %126 = arith.sitofp %125 : vector<8x20xi32> to vector<8x20xf32>
    %cst_33 = arith.constant 0xFF800000 : f32
    %127 = vector.broadcast %cst_33 : f32 to vector<8x20xf32>
    %128 = arith.select %124, %127, %114 : vector<8x20xi1>, vector<8x20xf32>
    %cst_34 = arith.constant dense<0xFF800000> : vector<8xf32>
    %129 = vector.multi_reduction <maximumf>, %128, %cst_34 [1] : vector<8x20xf32> to vector<8xf32>
    %130 = vector.shape_cast %129 : vector<8xf32> to vector<8x1xf32>
    %131 = vector.broadcast %130 : vector<8x1xf32> to vector<8x20xf32>
    %132 = arith.cmpf oeq, %128, %131 : vector<8x20xf32>
    %cst_35 = arith.constant 2.000000e+01 : f32
    %133 = vector.broadcast %cst_35 : f32 to vector<8x20xf32>
    %134 = arith.select %132, %100, %133 : vector<8x20xi1>, vector<8x20xf32>
    %cst_36 = arith.constant dense<0x7F800000> : vector<8xf32>
    %135 = vector.multi_reduction <minimumf>, %134, %cst_36 [1] : vector<8x20xf32> to vector<8xf32>
    %136 = vector.shape_cast %135 : vector<8xf32> to vector<8x1xf32>
    %137 = vector.broadcast %136 : vector<8x1xf32> to vector<8x20xf32>
    %138 = arith.cmpf oeq, %100, %137 : vector<8x20xf32>
    %139 = arith.extui %138 : vector<8x20xi1> to vector<8x20xi32>
    %140 = arith.sitofp %139 : vector<8x20xi32> to vector<8x20xf32>
    %cst_37 = arith.constant 0xFF800000 : f32
    %141 = vector.broadcast %cst_37 : f32 to vector<8x20xf32>
    %142 = arith.select %138, %141, %128 : vector<8x20xi1>, vector<8x20xf32>
    %cst_38 = arith.constant dense<0xFF800000> : vector<8xf32>
    %143 = vector.multi_reduction <maximumf>, %142, %cst_38 [1] : vector<8x20xf32> to vector<8xf32>
    %144 = vector.shape_cast %143 : vector<8xf32> to vector<8x1xf32>
    %145 = vector.broadcast %144 : vector<8x1xf32> to vector<8x20xf32>
    %146 = arith.cmpf oeq, %142, %145 : vector<8x20xf32>
    %cst_39 = arith.constant 2.000000e+01 : f32
    %147 = vector.broadcast %cst_39 : f32 to vector<8x20xf32>
    %148 = arith.select %146, %100, %147 : vector<8x20xi1>, vector<8x20xf32>
    %cst_40 = arith.constant dense<0x7F800000> : vector<8xf32>
    %149 = vector.multi_reduction <minimumf>, %148, %cst_40 [1] : vector<8x20xf32> to vector<8xf32>
    %150 = vector.shape_cast %149 : vector<8xf32> to vector<8x1xf32>
    %151 = vector.broadcast %150 : vector<8x1xf32> to vector<8x20xf32>
    %152 = arith.cmpf oeq, %100, %151 : vector<8x20xf32>
    %153 = arith.extui %152 : vector<8x20xi1> to vector<8x20xi32>
    %154 = arith.sitofp %153 : vector<8x20xi32> to vector<8x20xf32>
    %155 = tpu.concatenate %112, %126, %140, %154 in 0 : vector<8x20xf32>, vector<8x20xf32>, vector<8x20xf32>, vector<8x20xf32> -> vector<32x20xf32>
    %c0_41 = arith.constant 0 : index
    %c0_42 = arith.constant 0 : index
    %156 = vector.load %arg3[%c0_41, %c0_42] : memref<20x32xf32, #tpu.memory_space<vmem>>, vector<20x32xf32>
    %cst_43 = arith.constant dense<0.000000e+00> : vector<32x32xf32>
    %157 = tpu.matmul %155, %156, %cst_43 {dimension_numbers = #tpu.dot_dimension_numbers<[1], [0], [0], [1], [0, 0, 1, 1], [], []>} : vector<32x20xf32>, vector<20x32xf32>, vector<32x32xf32> -> vector<32x32xf32>
    %cst_44 = arith.constant dense<0.000000e+00> : vector<32xf32>
    %158 = vector.multi_reduction <add>, %157, %cst_44 [1] : vector<32x32xf32> to vector<32xf32>
    %159 = vector.shape_cast %158 : vector<32xf32> to vector<32x1xf32>
    %cst_45 = arith.constant 3.200000e+01 : f32
    %160 = vector.broadcast %cst_45 : f32 to vector<32x1xf32>
    %161 = arith.divf %159, %160 : vector<32x1xf32>
    %162 = vector.broadcast %161 : vector<32x1xf32> to vector<32x32xf32>
    %163 = arith.subf %157, %162 : vector<32x32xf32>
    %164 = arith.mulf %163, %163 : vector<32x32xf32>
    %cst_46 = arith.constant dense<0.000000e+00> : vector<32xf32>
    %165 = vector.multi_reduction <add>, %164, %cst_46 [1] : vector<32x32xf32> to vector<32xf32>
    %166 = vector.shape_cast %165 : vector<32xf32> to vector<32x1xf32>
    %cst_47 = arith.constant 3.200000e+01 : f32
    %167 = vector.broadcast %cst_47 : f32 to vector<32x1xf32>
    %168 = arith.divf %166, %167 : vector<32x1xf32>
    %169 = vector.broadcast %161 : vector<32x1xf32> to vector<32x32xf32>
    %170 = arith.subf %157, %169 : vector<32x32xf32>
    %cst_48 = arith.constant 9.99999974E-6 : f32
    %171 = vector.broadcast %cst_48 : f32 to vector<32x1xf32>
    %172 = arith.addf %168, %171 : vector<32x1xf32>
    %173 = math.rsqrt %172 : vector<32x1xf32>
    %174 = vector.broadcast %173 : vector<32x1xf32> to vector<32x32xf32>
    %175 = arith.mulf %170, %174 : vector<32x32xf32>
    %176 = vector.broadcast %13 : vector<1x32xf32> to vector<32x32xf32>
    %177 = arith.mulf %175, %176 : vector<32x32xf32>
    %178 = vector.broadcast %14 : vector<1x32xf32> to vector<32x32xf32>
    %179 = arith.addf %177, %178 : vector<32x32xf32>
    %180 = tpu.concatenate %61, %61, %61, %61 in 0 : vector<8x32xf32>, vector<8x32xf32>, vector<8x32xf32>, vector<8x32xf32> -> vector<32x32xf32>
    %cst_49 = arith.constant dense<0.000000e+00> : vector<32x32xf32>
    %181 = tpu.matmul %179, %4, %cst_49 {dimension_numbers = #tpu.dot_dimension_numbers<[1], [0], [0], [1], [0, 0, 1, 1], [], []>} : vector<32x32xf32>, vector<32x32xf32>, vector<32x32xf32> -> vector<32x32xf32>
    %182 = arith.addf %180, %181 : vector<32x32xf32>
    %183 = arith.mulf %182, %182 : vector<32x32xf32>
    %184 = arith.mulf %182, %183 : vector<32x32xf32>
    %cst_50 = arith.constant 4.471500e-02 : f32
    %185 = vector.broadcast %cst_50 : f32 to vector<32x32xf32>
    %186 = arith.mulf %185, %184 : vector<32x32xf32>
    %187 = arith.addf %182, %186 : vector<32x32xf32>
    %cst_51 = arith.constant 0.797884583 : f32
    %188 = vector.broadcast %cst_51 : f32 to vector<32x32xf32>
    %189 = arith.mulf %188, %187 : vector<32x32xf32>
    %190 = math.tanh %189 : vector<32x32xf32>
    %cst_52 = arith.constant 1.000000e+00 : f32
    %191 = vector.broadcast %cst_52 : f32 to vector<32x32xf32>
    %192 = arith.addf %191, %190 : vector<32x32xf32>
    %cst_53 = arith.constant 5.000000e-01 : f32
    %193 = vector.broadcast %cst_53 : f32 to vector<32x32xf32>
    %194 = arith.mulf %193, %192 : vector<32x32xf32>
    %195 = arith.mulf %182, %194 : vector<32x32xf32>
    %cst_54 = arith.constant dense<0.000000e+00> : vector<32x32xf32>
    %196 = tpu.matmul %195, %5, %cst_54 {dimension_numbers = #tpu.dot_dimension_numbers<[1], [0], [0], [1], [0, 0, 1, 1], [], []>} : vector<32x32xf32>, vector<32x32xf32>, vector<32x32xf32> -> vector<32x32xf32>
    %197 = vector.broadcast %15 : vector<1x32xf32> to vector<32x32xf32>
    %198 = arith.addf %196, %197 : vector<32x32xf32>
    %199 = arith.mulf %198, %198 : vector<32x32xf32>
    %200 = arith.mulf %198, %199 : vector<32x32xf32>
    %cst_55 = arith.constant 4.471500e-02 : f32
    %201 = vector.broadcast %cst_55 : f32 to vector<32x32xf32>
    %202 = arith.mulf %201, %200 : vector<32x32xf32>
    %203 = arith.addf %198, %202 : vector<32x32xf32>
    %cst_56 = arith.constant 0.797884583 : f32
    %204 = vector.broadcast %cst_56 : f32 to vector<32x32xf32>
    %205 = arith.mulf %204, %203 : vector<32x32xf32>
    %206 = math.tanh %205 : vector<32x32xf32>
    %cst_57 = arith.constant 1.000000e+00 : f32
    %207 = vector.broadcast %cst_57 : f32 to vector<32x32xf32>
    %208 = arith.addf %207, %206 : vector<32x32xf32>
    %cst_58 = arith.constant 5.000000e-01 : f32
    %209 = vector.broadcast %cst_58 : f32 to vector<32x32xf32>
    %210 = arith.mulf %209, %208 : vector<32x32xf32>
    %211 = arith.mulf %198, %210 : vector<32x32xf32>
    %cst_59 = arith.constant dense<0.000000e+00> : vector<32x16xf32>
    %212 = tpu.matmul %211, %6, %cst_59 {dimension_numbers = #tpu.dot_dimension_numbers<[1], [0], [0], [1], [0, 0, 1, 1], [], []>} : vector<32x32xf32>, vector<32x16xf32>, vector<32x16xf32> -> vector<32x16xf32>
    %213 = vector.broadcast %16 : vector<1x16xf32> to vector<32x16xf32>
    %214 = arith.addf %212, %213 : vector<32x16xf32>
    %cst_60 = arith.constant dense<0xFF800000> : vector<32xf32>
    %215 = vector.multi_reduction <maximumf>, %214, %cst_60 [1] : vector<32x16xf32> to vector<32xf32>
    %216 = vector.shape_cast %215 : vector<32xf32> to vector<32x1xf32>
    %217 = vector.broadcast %216 : vector<32x1xf32> to vector<32x16xf32>
    %218 = arith.subf %214, %217 : vector<32x16xf32>
    %219 = math.exp %218 : vector<32x16xf32>
    %cst_61 = arith.constant dense<0.000000e+00> : vector<32xf32>
    %220 = vector.multi_reduction <add>, %219, %cst_61 [1] : vector<32x16xf32> to vector<32xf32>
    %221 = vector.shape_cast %220 : vector<32xf32> to vector<32x1xf32>
    %222 = math.log %221 : vector<32x1xf32>
    %223 = arith.addf %216, %222 : vector<32x1xf32>
    %224 = vector.broadcast %223 : vector<32x1xf32> to vector<32x16xf32>
    %225 = arith.subf %214, %224 : vector<32x16xf32>
    %cst_62 = arith.constant 2.77258873 : f32
    %226 = vector.broadcast %cst_62 : f32 to vector<32x16xf32>
    %227 = arith.addf %225, %226 : vector<32x16xf32>
    %cst_63 = arith.constant dense<0.000000e+00> : vector<32x384xf32>
    %228 = tpu.matmul %227, %19, %cst_63 {dimension_numbers = #tpu.dot_dimension_numbers<[1], [0], [0], [1], [0, 0, 1, 1], [], []>} : vector<32x16xf32>, vector<16x384xf32>, vector<32x384xf32> -> vector<32x384xf32>
    %229 = vector.broadcast %20 : vector<1x384xf32> to vector<8x384xf32>
    %230 = vector.broadcast %108 : vector<8x1xf32> to vector<8x384xf32>
    %231 = arith.cmpf oeq, %229, %230 : vector<8x384xf32>
    %232 = vector.extract_strided_slice %228 {offsets = [0, 0], sizes = [8, 384], strides = [1, 1]} : vector<32x384xf32> to vector<8x384xf32>
    %cst_64 = arith.constant 0.000000e+00 : f32
    %233 = vector.broadcast %cst_64 : f32 to vector<8x384xf32>
    %234 = arith.select %231, %232, %233 : vector<8x384xi1>, vector<8x384xf32>
    %235 = arith.addf %98, %234 : vector<8x384xf32>
    %236 = vector.broadcast %20 : vector<1x384xf32> to vector<8x384xf32>
    %237 = vector.broadcast %122 : vector<8x1xf32> to vector<8x384xf32>
    %238 = arith.cmpf oeq, %236, %237 : vector<8x384xf32>
    %239 = vector.extract_strided_slice %228 {offsets = [8, 0], sizes = [8, 384], strides = [1, 1]} : vector<32x384xf32> to vector<8x384xf32>
    %cst_65 = arith.constant 0.000000e+00 : f32
    %240 = vector.broadcast %cst_65 : f32 to vector<8x384xf32>
    %241 = arith.select %238, %239, %240 : vector<8x384xi1>, vector<8x384xf32>
    %242 = arith.addf %235, %241 : vector<8x384xf32>
    %243 = vector.broadcast %20 : vector<1x384xf32> to vector<8x384xf32>
    %244 = vector.broadcast %136 : vector<8x1xf32> to vector<8x384xf32>
    %245 = arith.cmpf oeq, %243, %244 : vector<8x384xf32>
    %246 = vector.extract_strided_slice %228 {offsets = [16, 0], sizes = [8, 384], strides = [1, 1]} : vector<32x384xf32> to vector<8x384xf32>
    %cst_66 = arith.constant 0.000000e+00 : f32
    %247 = vector.broadcast %cst_66 : f32 to vector<8x384xf32>
    %248 = arith.select %245, %246, %247 : vector<8x384xi1>, vector<8x384xf32>
    %249 = arith.addf %242, %248 : vector<8x384xf32>
    %250 = vector.broadcast %20 : vector<1x384xf32> to vector<8x384xf32>
    %251 = vector.broadcast %150 : vector<8x1xf32> to vector<8x384xf32>
    %252 = arith.cmpf oeq, %250, %251 : vector<8x384xf32>
    %253 = vector.extract_strided_slice %228 {offsets = [24, 0], sizes = [8, 384], strides = [1, 1]} : vector<32x384xf32> to vector<8x384xf32>
    %cst_67 = arith.constant 0.000000e+00 : f32
    %254 = vector.broadcast %cst_67 : f32 to vector<8x384xf32>
    %255 = arith.select %252, %253, %254 : vector<8x384xi1>, vector<8x384xf32>
    %256 = arith.addf %249, %255 : vector<8x384xf32>
    %c0_68 = arith.constant 0 : index
    %c0_69 = arith.constant 0 : index
    %257 = vector.load %arg5[%c0_68, %c0_69] : memref<8x384xf32, #tpu.memory_space<vmem>>, vector<8x384xf32>
    tpu.vector_store %arg5[%c0_68, %c0_69], %256 {strides = array<i32>} : memref<8x384xf32, #tpu.memory_space<vmem>>, vector<8x384xf32>,
    return
  }
}

</mosaic_0001>

<bundles_post_ra>
// kernel: run.1
= control target key start
LH: loop header
LB: loop body
LE: loop exit
PB: predicated region body
PF: predicated region fallthrough
CT: control target
= control target key end

     0   :  { %10 = vsyncpa [#allocation3], 0  ;;  %s2560_s0 = inlined_call_operand.vmem [shape: f32[8,32], index: 0, kind: input, shape index: {}]   ;;  %s2561_s1 = inlined_call_operand.hbm [shape: f32[32,197], index: 1, kind: input, shape index: {}]   ;;  %s2562_s2 = inlined_call_operand.hbm [shape: f32[9,128], index: 2, kind: input, shape index: {}]   ;;  %s2563_s3 = inlined_call_operand.hbm [shape: f32[20,32], index: 3, kind: input, shape index: {}]   ;;  %s2564_s4 = inlined_call_operand.hbm [shape: f32[37,384], index: 4, kind: input, shape index: {}]   ;;  %s2565_s5 = inlined_call_operand.hbm [shape: f32[8,384], index: 5, kind: output, shape index: {}]  }
   0x1   :  { %11 = vsyncpa [#allocation6], 0 }
   0x2   :  { %12 = vsyncpa [#allocation9], 0 }
   0x3   :  { %13 = vsyncpa [#allocation4], 0  ;;  %s2128_s18 = smov [#allocation5]   ;;  %s2010_s22 = scalar_lea.hbm %s2562_s2, 256 }
   0x4   :  { %s33_s19 = sshll.u32 %s2128_s18, 4  ;;  %p2011_p0 = scmp.ne.s32.totalorder %s2562_s2, %s2010_s22  ;;  %s34_s19 = int_to_ptr.vmem [resolvable:$true] %s33_s19 }
   0x5   :  { %p2014_p1 = scmp.lt.u32.totalorder %s2010_s22, %s2562_s2 }
   0x7   :  { %p2016_p2 = pnand %p2014_p1, %p2011_p0 }
   0x9   :  { %2019 = shalt.err (!%p2016_p2)
}
   0xa   :  { %s2020_s27 = scalar_lea.vmem %s34_s19, 256  ;;  %p2025_p4 = scmp.lt.s32.totalorder %s34_s19, %s34_s19 }
   0xb   :  { %p2021_p3 = scmp.ne.s32.totalorder %s34_s19, %s2020_s27  ;;  %p2026_p5 = scmp.lt.s32.totalorder %s2020_s27, %s2020_s27 }
   0xd   :  { %p2027_p6 = por %p2026_p5, %p2025_p4 }
   0xf   :  { %p2028_p7 = pnand %p2027_p6, %p2021_p3 }
  0x11   :  { %2031 = shalt.err (!%p2028_p7)
}
  0x12   :  { %s2129_s28 = smov 128   ;;  %s2130_s29 = smov 8  }
  0x13   :  { %39 = dma.hbm_to_vmem [thread:$0]  %s2562_s2, 256, %s34_s19, [#allocation6], %s2129_s28, %s2129_s28, %s2130_s29  }
  0x14   :  { %s2131_s7 = smov [#allocation2]   ;;  %s2032_s11 = scalar_lea.hbm %s2561_s1, 1024 }
  0x15   :  { %s21_s8 = sshll.u32 %s2131_s7, 4  ;;  %p2033_p8 = scmp.ne.s32.totalorder %s2561_s1, %s2032_s11  ;;  %s22_s8 = int_to_ptr.vmem [resolvable:$true] %s21_s8 }
  0x16   :  { %p2036_p9 = scmp.lt.u32.totalorder %s2032_s11, %s2561_s1 }
  0x18   :  { %p2038_p10 = pnand %p2036_p9, %p2033_p8 }
  0x1a   :  { %2041 = shalt.err (!%p2038_p10)
}
  0x1b   :  { %s2042_s16 = scalar_lea.vmem %s22_s8, 1024  ;;  %p2047_p12 = scmp.lt.s32.totalorder %s22_s8, %s22_s8 }
  0x1c   :  { %p2043_p11 = scmp.ne.s32.totalorder %s22_s8, %s2042_s16  ;;  %p2048_p13 = scmp.lt.s32.totalorder %s2042_s16, %s2042_s16 }
  0x1e   :  { %p2049_p0 = por %p2048_p13, %p2047_p12 }
  0x20   :  { %p2050_p1 = pnand %p2049_p0, %p2043_p11 }
  0x22   :  { %2053 = shalt.err (!%p2050_p1)
}
  0x23   :  { %s2132_s2 = smov 256   ;;  %s2133_s17 = smov 16  }
  0x24   :  { %27 = dma.hbm_to_vmem [thread:$0]  %s2561_s1, 1024, %s22_s8, [#allocation3], %s2132_s2, %s2132_s2, %s2133_s17  }
  0x25   :  { %s2134_s20 = smov [#allocation7]   ;;  %s2135_s22 = smov [#allocation8]  }
  0x26   :  { %s45_s21 = sshll.u32 %s2134_s20, 4  ;;  %s57_s23 = sshll.u32 %s2135_s22, 4  ;;  %s46_s21 = int_to_ptr.vmem [resolvable:$true] %s45_s21  ;;  %s2208_s23 = int_to_ptr.vmem [resolvable:$true] %s57_s23 }
  0x27   :  { %s2054_s26 = scalar_lea.hbm %s2563_s3, 384 }
  0x28   :  { %p2055_p2 = scmp.ne.s32.totalorder %s2563_s3, %s2054_s26  ;;  %p2058_p3 = scmp.lt.u32.totalorder %s2054_s26, %s2563_s3 }
  0x2a   :  { %p2060_p4 = pnand %p2058_p3, %p2055_p2 }
  0x2c   :  { %2063 = shalt.err (!%p2060_p4)
}
  0x2d   :  { %s2064_s1 = scalar_lea.vmem %s46_s21, 384  ;;  %p2069_p6 = scmp.lt.s32.totalorder %s46_s21, %s46_s21 }
  0x2e   :  { %p2065_p5 = scmp.ne.s32.totalorder %s46_s21, %s2064_s1  ;;  %p2070_p7 = scmp.lt.s32.totalorder %s2064_s1, %s2064_s1 }
  0x30   :  { %p2071_p8 = por %p2070_p7, %p2069_p6 }
  0x32   :  { %p2072_p9 = pnand %p2071_p8, %p2065_p5 }
  0x34   :  { %2075 = shalt.err (!%p2072_p9)
}
  0x35   :  { %51 = dma.hbm_to_vmem [thread:$0]  %s2563_s3, 384, %s46_s21, [#allocation6], %s2129_s28, %s2129_s28, %s2130_s29  }
  0x36   :  { %s2076_s12 = scalar_lea.hbm %s2564_s4, 1920 }
  0x37   :  { %p2077_p10 = scmp.ne.s32.totalorder %s2564_s4, %s2076_s12  ;;  %p2080_p11 = scmp.lt.u32.totalorder %s2076_s12, %s2564_s4 }
  0x39   :  { %p2082_p12 = pnand %p2080_p11, %p2077_p10 }
  0x3b   :  { %2085 = shalt.err (!%p2082_p12)
}
  0x3c   :  { %s2086_s2 = scalar_lea.vmem %s2208_s23, 1920  ;;  %p2091_p0 = scmp.lt.s32.totalorder %s2208_s23, %s2208_s23 }
  0x3d   :  { %p2087_p13 = scmp.ne.s32.totalorder %s2208_s23, %s2086_s2  ;;  %p2092_p1 = scmp.lt.s32.totalorder %s2086_s2, %s2086_s2 }
  0x3f   :  { %p2093_p2 = por %p2092_p1, %p2091_p0 }
  0x41   :  { %p2094_p3 = pnand %p2093_p2, %p2087_p13 }
  0x43   :  { %2097 = shalt.err (!%p2094_p3)
}
  0x44   :  { %s2136_s3 = smov 384   ;;  %s2137_s28 = smov 24  }
  0x45   :  { %63 = dma.hbm_to_vmem [thread:$0]  %s2564_s4, 1920, %s2208_s23, [#allocation9], %s2136_s3, %s2136_s3, %s2137_s28  }
  0x46   :  { %2120 = dma.done.wait [#allocation3], 1024  }
  0x47   :  { %2121 = vsyncadd [#allocation3], 4294966272 }
  0x48   :  { %2122 = dma.done.wait [#allocation6], 640  }
  0x49   :  { %2123 = vsyncadd [#allocation6], 4294966656 }
  0x4a   :  { %2124 = dma.done.wait [#allocation9], 1920  }
  0x4b   :  { %2125 = vsyncadd [#allocation9], 4294965376  ;;  %vm102_vm0 = vcmask 261120   ;;  %v101_v0 = vld [vmem:[%s2560_s0] sm:$0xff]  ;;  %v2249_v8 = vld [vmem:[#allocation2 + $0x10] sm:$0xff]  ;;  %v2138_v10 = vmov 0.0|0.0   ;;  %v117_v19 = vlaneseq }
  0x4c   :  { %v103_v1 = vsel %vm102_vm0, %v101_v0, 0.0  ;;  %v2247_v7 = vld [vmem:[#allocation2] sm:$0xff]  ;;  %1819 = vmatprep.subr.bf16.mxu0 %v2138_v10  ;;  %v2256_v12 = vld [vmem:[#allocation2 + $0x30] sm:$0xff]  ;;  %vm2139_vm1 = vmmov 0   ;;  %v2140_v13 = vmov 0.0   ;;  %1825 = vmatprep.subr.bf16.mxu1 %v2138_v10  ;;  %s2141_s0 = smov 63  }
  0x4d   :  { %104 = vadd.xlane.f32.xlu0 %v103_v1  ;;  %v2251_v9 = vld [vmem:[#allocation2 + $0x20] sm:$0xff]  ;;  %v1820_v11 = vpack.c.bf16 %v2249_v8, %v2247_v7  ;;  %1721 = vmatprep.mubr.msk.f32.mxu0 %vm2139_vm1, %v2140_v13  ;;  %v1903_v15 = vpack.i.bf16 %v2249_v8, %v2247_v7  ;;  %v2272_v21 = vshrl.u32 %v117_v19, 7  ;;  %s2142_s4 = smov 31   ;;  %v87_v61 = vld [vmem:[#allocation8 + $0x8] sm:$0xff]  ;;  %v90_v62 = vld [vmem:[#allocation8 + $0x20] sm:$0xff]  ;;  %vm411_vm2 = vcmask 1043456  }
  0x4e   :  { %1732 = vmatprep.mubr.msk.f32.mxu1 %vm2139_vm1, %v2140_v13  ;;  %v1823_v14 = vpack.c.bf16 %v2256_v12, %v2251_v9  ;;  %v1908_v16 = vpack.i.bf16 %v2256_v12, %v2251_v9  ;;  %v2275_v23 = vld [vmem:[#allocation5] sm:$0xff]  ;;  %v86_v63 = vld [vmem:[#allocation8] sm:$0xff]  ;;  %vm407_vm3 = vcmask 162816   ;;  %s2143_s20 = smov 11   ;;  %vm846_vm12 = vcmask 89088   ;;  %s2144_s21 = smov 32  }
  0x4f   :  { %1821 = vmatpush3.bf16.msra.mxu0 %v1820_v11  ;;  %1904 = vrot.lane.b32.xlu1 %v1903_v15, %s2141_s0  ;;  %v119_v22 = vsub.s32 0, %v2272_v21  ;;  %v124_v24 = vsub.s32 1, %v2272_v21  ;;  %v129_v39 = vsub.s32 2, %v2272_v21  ;;  %v89_v1 = vld [vmem:[#allocation8 + $0x18] sm:$0xff]  ;;  %s2145_s22 = smov 107   ;;  %s2146_s23 = smov 96  }
  0x50   :  { %1822 = vmatprep.subr.bf16.mxu0 %v2138_v10  ;;  %s2147_s24 = smov 75   ;;  %vm1278_vm13 = vcmask 130048   ;;  %s2150_s25 = smov [#allocation10]  }
  0x51   :  { %v120_v25 = vrot.slane %v2275_v23, %v119_v22  ;;  %v125_v28 = vrot.slane %v2275_v23, %v124_v24  ;;  %v130_v40 = vrot.slane %v2275_v23, %v129_v39  ;;  %s1605_s26 = sshll.u32 %s2150_s25, 4  ;;  %s1606_s26 = int_to_ptr.vmem [resolvable:$true] %s1605_s26 }
  0x52   :  { %s2098_s27 = scalar_lea.vmem %s1606_s26, 384  ;;  %p2103_p5 = scmp.lt.s32.totalorder %s1606_s26, %s1606_s26 }
  0x53   :  { %1824 = vmatpush3.bf16.msra.mxu0 %v1823_v14  ;;  %1909 = vrot.lane.b32.xlu1 %v1908_v16, %s2141_s0  ;;  %p2099_p4 = scmp.ne.s32.totalorder %s1606_s26, %s2098_s27  ;;  %p2104_p6 = scmp.lt.s32.totalorder %s2098_s27, %s2098_s27 }
  0x54   :  { %1831 = vmatprep.subr.bf16.mxu0 %v2138_v10 }
  0x55   :  { %p2105_p7 = por %p2104_p6, %p2103_p5 }
  0x57   :  { %1919 = vrot.lane.b32.xlu1 %v1908_v16, %s2142_s4  ;;  %p2106_p8 = pnand %p2105_p7, %p2099_p4 }
  0xc1   :  { %v1905_v31 = vpop.permute.xlu1 %1904 }
  0xc2   :  { %v1907_v32 = vunpack.i.h.bf16 %v1905_v31  ;;  %v1906_v33 = vunpack.i.l.bf16 %v1905_v31  ;;  %v91_v31 = vld [vmem:[#allocation8 + $0x28] sm:$0xff] }
  0xc4   :  { %v1826_v34 = vpack.c.bf16 %v1907_v32, %v1906_v33 }
  0xc5   :  { %v1910_v35 = vpop.permute.xlu1 %1909 }
  0xc6   :  { %v1912_v36 = vunpack.i.h.bf16 %v1910_v35  ;;  %v1911_v37 = vunpack.i.l.bf16 %v1910_v35  ;;  %1827 = vmatpush3.bf16.msra.mxu1 %v1826_v34 }
  0xc7   :  { %1828 = vmatprep.subr.bf16.mxu1 %v2138_v10 }
  0xc8   :  { %v1829_v38 = vpack.c.bf16 %v1912_v36, %v1911_v37  ;;  %v2324_v37 = vand.u32 127, %v117_v19 }
  0xc9   :  { %v1920_v57 = vpop.permute.xlu1 %1919 }
  0xca   :  { %1830 = vmatpush3.bf16.msra.mxu1 %v1829_v38  ;;  %v1922_v58 = vunpack.i.h.bf16 %v1920_v57  ;;  %v1921_v59 = vunpack.i.l.bf16 %v1920_v57  ;;  %v2327_v38 = vcvt.s32.f32 %v2324_v37 }
  0xcc   :  { %v1835_v60 = vpack.c.bf16 %v1922_v58, %v1921_v59 }
  0xda   :  { %v105_v2 = vpop.xlane.xlu0 %104 }
  0xdb   :  { %v107_v3 = vmul.f32 0.03125, %v105_v2  ;;  %v1839_v2 = vpack.c.bf16 %v89_v1, %v86_v63 }
  0xdd   :  { %v108_v4 = vsub.f32 %v101_v0, %v107_v3  ;;  %v1837_v0 = vpack.c.bf16 %v90_v62, %v87_v61  ;;  %v215_v3 = vsub.s32 3, %v2272_v21 }
  0xdf   :  { %v109_v5 = vmul.f32 %v108_v4, %v108_v4  ;;  %1838 = vmatprep.subr.bf16.mxu1 %v1837_v0 }
  0xe1   :  { %v110_v6 = vsel %vm102_vm0, %v109_v5, 0.0 }
  0xe2   :  { %111 = vadd.xlane.f32.xlu0 %v110_v6 }
  0xf8   :  { %1914 = vrot.lane.b32.xlu0 %v1903_v15, %s2142_s4 }
 0x16f   :  { %v112_v17 = vpop.xlane.xlu0 %111 }
 0x170   :  { %v113_v18 = vmul.f32 0.03125, %v112_v17 }
 0x172   :  { %v114_v20 = vadd.f32 1e-05, %v113_v18 }
 0x173   :  { %v1915_v53 = vpop.permute.xlu0 %1914 }
 0x174   :  { %1964 = vrsqrt.f32 %v114_v20  ;;  %v1917_v54 = vunpack.i.h.bf16 %v1915_v53  ;;  %v1916_v55 = vunpack.i.l.bf16 %v1915_v53 }
 0x176   :  { %v1832_v56 = vpack.c.bf16 %v1917_v54, %v1916_v55 }
 0x17e   :  { %v1965_v26 = vpop.eup %1964 }
 0x17f   :  { %v116_v27 = vmul.f32 %v1965_v26, %v108_v4  ;;  %v216_v4 = vrot.slane %v2275_v23, %v215_v3  ;;  %v2299_v26 = vld [vmem:[#allocation8 + $0x38] sm:$0xff] }
 0x181   :  { %v121_v29 = vmul.f32 %v120_v25, %v116_v27  ;;  %v2303_v27 = vld [vmem:[#allocation8 + $0x30] sm:$0xff] }
 0x183   :  { %v126_v30 = vadd.f32 %v125_v28, %v121_v29  ;;  %v2309_v28 = vsub.s32 4, %v2272_v21 }
 0x185   :  { %1722 = vmatmul.mubr.msk.f32.vlgmr.msra.gmra.mrb[0].mxu0 %vm102_vm0, %v126_v30  ;;  %v318_v29 = vrot.slane %v2275_v23, %v2309_v28  ;;  %v88_v30 = vld [vmem:[#allocation8 + $0x10] sm:$0xff] }
 0x186   :  { %1743 = vmatprep.mubr.msk.f32.mxu0 %vm2139_vm1, %v2140_v13  ;;  %1833 = vmatpush3.bf16.msra.mxu0 %v1832_v56  ;;  %v1842_v33 = vpack.c.bf16 %v91_v31, %v88_v30  ;;  %v657_v56 = vld [vmem:[#allocation7 + $0x10] sm:$0xf] }
 0x187   :  { %1834 = vmatprep.subr.bf16.mxu0 %v2138_v10 }
 0x18a   :  { %1836 = vmatpush3.bf16.msra.mxu0 %v1835_v60 }
 0x258   :  { %v200_v41 = vpop.f32.mrb[0].mxu0 }
 0x259   :  { %v2286_v42 = vadd.f32 %v200_v41, %v130_v40  ;;  %v1723_v43 = vpop.f32.mrb[1].mxu0 }
 0x25b   :  { %v204_v44 = vmul.f32 %v2286_v42, %v2286_v42 }
 0x25d   :  { %v205_v45 = vmul.f32 %v204_v44, %v2286_v42 }
 0x25f   :  { %v206_v46 = vmul.f32 0.044715, %v205_v45 }
 0x261   :  { %v207_v47 = vadd.f32 %v206_v46, %v2286_v42 }
 0x263   :  { %v208_v48 = vmul.f32 0.7978846, %v207_v47 }
 0x265   :  { %1966 = vtanh.f32 %v208_v48 }
 0x26f   :  { %v1967_v49 = vpop.eup %1966 }
 0x270   :  { %v210_v50 = vadd.f32 1.0, %v1967_v49 }
 0x272   :  { %v211_v51 = vmul.f32 0.5, %v210_v50  ;;  %v655_v50 = vld [vmem:[#allocation7] sm:$0xff] }
 0x274   :  { %v212_v52 = vmul.f32 %v211_v51, %v2286_v42  ;;  %v656_v51 = vld [vmem:[#allocation7 + $0x8] sm:$0xff] }
 0x276   :  { %1733 = vmatmul.mubr.msk.f32.vlgmr.msra.gmra.mrb[0].mxu1 %vm102_vm0, %v212_v52  ;;  %v1844_v52 = vpack.c.bf16 %v656_v51, %v655_v50 }
 0x277   :  { %485 = vmatprep.mubr.f32.mxu1 %v2140_v13  ;;  %1840 = vmatpush1.bf16.msra.mxu1 %v1839_v2 }
 0x278   :  { %1619 = vmatprep.subr.msk.mxu1 %vm411_vm2, %v2299_v26  ;;  %1845 = vmatprep.subr.bf16.mxu0 %v1844_v52 }
 0x27b   :  { %1620 = vmatpush1.msk.msra.mxu1 %vm411_vm2, %v2303_v27 }
 0x27c   :  { %1841 = vmatprep.subr.bf16.mxu1 %v2138_v10  ;;  %v2316_v10 = vld [vmem:[#allocation8 + $0x40] sm:$0xff] }
 0x349   :  { %v302_v5 = vpop.f32.mrb[0].mxu1 }
 0x34a   :  { %v303_v6 = vadd.f32 %v302_v5, %v216_v4  ;;  %v1734_v11 = vpop.f32.mrb[1].mxu1 }
 0x34c   :  { %v306_v14 = vmul.f32 %v303_v6, %v303_v6 }
 0x34e   :  { %v307_v15 = vmul.f32 %v306_v14, %v303_v6 }
 0x350   :  { %v308_v16 = vmul.f32 0.044715, %v307_v15 }
 0x352   :  { %v309_v17 = vadd.f32 %v308_v16, %v303_v6 }
 0x354   :  { %v310_v18 = vmul.f32 0.7978846, %v309_v17 }
 0x356   :  { %1968 = vtanh.f32 %v310_v18 }
 0x360   :  { %v1969_v20 = vpop.eup %1968 }
 0x361   :  { %v312_v22 = vadd.f32 1.0, %v1969_v20 }
 0x363   :  { %v313_v24 = vmul.f32 0.5, %v312_v22 }
 0x365   :  { %v314_v25 = vmul.f32 %v313_v24, %v303_v6 }
 0x367   :  { %1744 = vmatmul.mubr.msk.f32.vlgmr.msra.gmra.mrb[2].mxu0 %vm102_vm0, %v314_v25 }
 0x368   :  { %1847 = vmatpush3.bf16.msra.mxu0 %v1844_v52 }
 0x369   :  { %1759 = vmatprep.subr.msk.mxu0 %vm411_vm2, %v657_v56 }
 0x36c   :  { %1760 = vmatpush3.msk.msra.mxu0 %vm411_vm2, %v657_v56 }
 0x43a   :  { %v400_v32 = vpop.f32.mrb[2].mxu0 }
 0x43b   :  { %v401_v34 = vadd.f32 %v400_v32, %v318_v29  ;;  %v1745_v35 = vpop.f32.mrb[3].mxu0 }
 0x43d   :  { %1621 = vmatmul.mubr.msk.f32.vlgmr.msra.gmra.mrb[2].mxu1 %vm407_vm3, %v401_v34  ;;  %v608_v36 = vsel %vm407_vm3, %v401_v34, -inf }
 0x43e   :  { %1843 = vmatpush3.bf16.msra.mxu1 %v1842_v33  ;;  %609 = vmax.xlane.f32.xlu1 %v608_v36 }
 0x43f   :  { %1750 = vmatprep.subr.mxu1 %v2140_v13  ;;  %1752 = vmatprep.mubr.msk.f32.mxu1 %vm2139_vm1, %v2140_v13 }
 0x442   :  { %1751 = vmatpush3.msk.msra.mxu1 %vm411_vm2, %v2316_v10 }
 0x443   :  { %1753 = vmatmul.mubr.msk.f32.vlgmr.msra.gmra.mrb[4].mxu1 %vm407_vm3, %v401_v34 }
 0x4cb   :  { %v610_v39 = vpop.xlane.xlu1 %609 }
 0x4cc   :  { %vm611_vm4 = vcmp.eq.f32.partialorder %v401_v34, %v610_v39 }
 0x4cd   :  { %v612_v40 = vsel %vm611_vm4, %v2327_v38, 20.0 }
 0x4ce   :  { %v613_v41 = vsel %vm407_vm3, %v612_v40, inf  ;;  %v2382_v40 = vld [vmem:[#allocation2 + $0x18] sm:$0xff] }
 0x4cf   :  { %614 = vmin.xlane.f32.xlu0 %v613_v41  ;;  %v1928_v41 = vpack.i.bf16 %v2382_v40, %v2249_v8 }
 0x510   :  { %v2331_v43 = vpop.f32.mrb[2].mxu1 }
 0x511   :  { %v2333_v44 = vpop.f32.mrb[3].mxu1 }
 0x516   :  { %v2335_v45 = vpop.f32.mrb[4].mxu1 }
 0x517   :  { %v1754_v46 = vpop.f32.mrb[5].mxu1 }
 0x518   :  { %v2386_v46 = vld [vmem:[#allocation2 + $0x8] sm:$0xff] }
 0x55c   :  { %v2337_v47 = vpop.xlane.xlu0 %614 }
 0x55d   :  { %vm616_vm5 = vcmp.eq.f32.partialorder %v2327_v38, %v2337_v47 }
 0x55e   :  { %v1627_v19 = vsel %vm616_vm5, 1.0, %v2140_v13  ;;  %v619_v48 = vsel %vm616_vm5, -inf, %v401_v34 }
 0x55f   :  { %1761 = vmatprep.mubr.msk.f32.mxu0 %vm407_vm3, %v1627_v19  ;;  %v620_v49 = vsel %vm407_vm3, %v619_v48, -inf  ;;  %v1923_v19 = vpack.i.bf16 %v2386_v46, %v2247_v7 }
 0x560   :  { %621 = vmax.xlane.f32.xlu1 %v620_v49 }
 0x5ed   :  { %v622_v53 = vpop.xlane.xlu1 %621 }
 0x5ee   :  { %vm623_vm6 = vcmp.eq.f32.partialorder %v619_v48, %v622_v53 }
 0x5ef   :  { %v624_v54 = vsel %vm623_vm6, %v2327_v38, 20.0 }
 0x5f0   :  { %v625_v55 = vsel %vm407_vm3, %v624_v54, inf }
 0x5f1   :  { %626 = vmin.xlane.f32.xlu1 %v625_v55 }
 0x67e   :  { %v2348_v57 = vpop.xlane.xlu1 %626 }
 0x67f   :  { %vm628_vm7 = vcmp.eq.f32.partialorder %v2327_v38, %v2348_v57 }
 0x680   :  { %v1628_v58 = vsel %vm628_vm7, 1.0, %v2140_v13  ;;  %v631_v59 = vsel %vm628_vm7, -inf, %v619_v48 }
 0x681   :  { %1762 = vmatmul.mubr.msk.f32.vlgmr.msra.gmra.mrb[4].mxu0 %vm407_vm3, %v1628_v58  ;;  %v632_v60 = vsel %vm407_vm3, %v631_v59, -inf }
 0x682   :  { %633 = vmax.xlane.f32.xlu1 %v632_v60 }
 0x70f   :  { %v634_v61 = vpop.xlane.xlu1 %633 }
 0x710   :  { %vm635_vm8 = vcmp.eq.f32.partialorder %v631_v59, %v634_v61 }
 0x711   :  { %v636_v62 = vsel %vm635_vm8, %v2327_v38, 20.0 }
 0x712   :  { %v637_v63 = vsel %vm407_vm3, %v636_v62, inf }
 0x713   :  { %638 = vmin.xlane.f32.xlu1 %v637_v63 }
 0x754   :  { %v1763_v0 = vpop.f32.mrb[4].mxu0 }
 0x755   :  { %v739_v1 = vpop.f32.mrb[5].mxu0  ;;  %v761_v16 = vsel %vm102_vm0, %v1763_v0, 0.0 }
 0x756   :  { %v758_v6 = vsel %vm102_vm0, %v739_v1, 0.0 }
 0x7a0   :  { %v2357_v2 = vpop.xlane.xlu1 %638 }
 0x7a1   :  { %vm640_vm9 = vcmp.eq.f32.partialorder %v2327_v38, %v2357_v2 }
 0x7a2   :  { %v1629_v3 = vsel %vm640_vm9, 1.0, %v2140_v13  ;;  %v643_v4 = vsel %vm640_vm9, -inf, %v631_v59 }
 0x7a3   :  { %1764 = vmatprep.mubr.msk.f32.mxu0 %vm407_vm3, %v1629_v3  ;;  %v644_v5 = vsel %vm407_vm3, %v643_v4, -inf }
 0x7a4   :  { %645 = vmax.xlane.f32.xlu0 %v644_v5 }
 0x7a8   :  { %759 = vadd.xlane.f32.xlu0 %v758_v6 }
 0x831   :  { %v646_v11 = vpop.xlane.xlu0 %645 }
 0x832   :  { %vm647_vm10 = vcmp.eq.f32.partialorder %v643_v4, %v646_v11  ;;  %v812_v11 = vsub.s32 5, %v2272_v21 }
 0x833   :  { %v648_v14 = vsel %vm647_vm10, %v2327_v38, 20.0 }
 0x834   :  { %v649_v15 = vsel %vm407_vm3, %v648_v14, inf  ;;  %v820_v14 = vsub.s32 6, %v2272_v21 }
 0x835   :  { %650 = vmin.xlane.f32.xlu1 %v649_v15  ;;  %v760_v22 = vpop.xlane.xlu0 %759  ;;  %v81_v15 = vld [vmem:[#allocation2 + $0x28] sm:$0xff] }
 0x836   :  { %v770_v25 = vmul.f32 0.03125, %v760_v22  ;;  %v821_v22 = vrot.slane %v2275_v23, %v820_v14 }
 0x838   :  { %v774_v30 = vsub.f32 %v739_v1, %v770_v25 }
 0x839   :  { %762 = vadd.xlane.f32.xlu1 %v761_v16  ;;  %v813_v16 = vrot.slane %v2275_v23, %v812_v11 }
 0x83a   :  { %v778_v36 = vmul.f32 %v774_v30, %v774_v30 }
 0x83c   :  { %v782_v39 = vsel %vm102_vm0, %v778_v36, 0.0 }
 0x8c2   :  { %v2368_v17 = vpop.xlane.xlu1 %650 }
 0x8c3   :  { %vm652_vm11 = vcmp.eq.f32.partialorder %v2327_v38, %v2368_v17 }
 0x8c4   :  { %v1630_v18 = vsel %vm652_vm11, 1.0, %v2140_v13 }
 0x8c5   :  { %1765 = vmatmul.mubr.msk.f32.gmra.mrb[6].mxu0 %vm407_vm3, %v1630_v18 }
 0x8c6   :  { %v763_v20 = vpop.xlane.xlu1 %762 }
 0x8c7   :  { %v771_v24 = vmul.f32 0.03125, %v763_v20 }
 0x8c9   :  { %v2374_v29 = vsub.f32 %v1763_v0, %v771_v24  ;;  %v1933_v24 = vpack.i.bf16 %v81_v15, %v2251_v9 }
 0x8cb   :  { %v779_v34 = vmul.f32 %v2374_v29, %v2374_v29 }
 0x8cd   :  { %v785_v38 = vsel %vm102_vm0, %v779_v34, 0.0 }
 0x998   :  { %v1766_v31 = vpop.f32.mrb[6].mxu0 }
 0x999   :  { %v749_v32 = vpop.f32.mrb[7].mxu0  ;;  %v767_v33 = vsel %vm102_vm0, %v1766_v31, 0.0 }
 0x99a   :  { %768 = vadd.xlane.f32.xlu1 %v767_v33  ;;  %v764_v35 = vsel %vm102_vm0, %v749_v32, 0.0 }
 0x99b   :  { %765 = vadd.xlane.f32.xlu0 %v764_v35 }
 0x99e   :  { %786 = vadd.xlane.f32.xlu1 %v785_v38 }
 0x99f   :  { %783 = vadd.xlane.f32.xlu0 %v782_v39 }
 0x9af   :  { %1929 = vrot.lane.b32.xlu1 %v1928_v41, %s2143_s20 }
 0x9b5   :  { %1924 = vrot.lane.b32.xlu0 %v1923_v19, %s2143_s20 }
 0xa27   :  { %v769_v48 = vpop.xlane.xlu1 %768 }
 0xa28   :  { %v773_v49 = vmul.f32 0.03125, %v769_v48  ;;  %v766_v50 = vpop.xlane.xlu0 %765 }
 0xa29   :  { %v772_v51 = vmul.f32 0.03125, %v766_v50 }
 0xa2a   :  { %v2392_v52 = vsub.f32 %v1766_v31, %v773_v49  ;;  %v83_v31 = vld [vmem:[#allocation2 + $0x38] sm:$0xff] }
 0xa2b   :  { %v2394_v53 = vsub.f32 %v749_v32, %v772_v51  ;;  %v787_v54 = vpop.xlane.xlu1 %786  ;;  %v1938_v33 = vpack.i.bf16 %v83_v31, %v2256_v12  ;;  %v2421_v14 = vpack.i.bf16 %v83_v31, %v81_v15 }
 0xa2c   :  { %v784_v8 = vpop.xlane.xlu0 %783  ;;  %v781_v55 = vmul.f32 %v2392_v52, %v2392_v52  ;;  %v795_v34 = vmul.f32 0.03125, %v787_v54 }
 0xa2d   :  { %v794_v56 = vmul.f32 0.03125, %v784_v8  ;;  %v780_v58 = vmul.f32 %v2394_v53, %v2394_v53 }
 0xa2e   :  { %v791_v7 = vsel %vm102_vm0, %v781_v55, 0.0  ;;  %v799_v35 = vadd.f32 1e-05, %v795_v34 }
 0xa2f   :  { %v798_v59 = vadd.f32 1e-05, %v794_v56  ;;  %792 = vadd.xlane.f32.xlu1 %v791_v7  ;;  %v788_v60 = vsel %vm102_vm0, %v780_v58, 0.0  ;;  %v1930_v61 = vpop.permute.xlu1 %1929 }
 0xa30   :  { %789 = vadd.xlane.f32.xlu0 %v788_v60  ;;  %v1932_v62 = vunpack.i.h.bf16 %v1930_v61  ;;  %v1931_v63 = vunpack.i.l.bf16 %v1930_v61  ;;  %v1925_v0 = vpop.permute.xlu0 %1924 }
 0xa31   :  { %1970 = vrsqrt.f32 %v798_v59  ;;  %v1927_v1 = vunpack.i.h.bf16 %v1925_v0  ;;  %v1926_v3 = vunpack.i.l.bf16 %v1925_v0 }
 0xa32   :  { %v848_v4 = vsel %vm846_vm12, %v1931_v63, %v1932_v62  ;;  %1972 = vrsqrt.f32 %v799_v35 }
 0xa33   :  { %v847_v5 = vsel %vm846_vm12, %v1926_v3, %v1927_v1 }
 0xa34   :  { %v1848_v6 = vpack.c.bf16 %v848_v4, %v847_v5 }
 0xa36   :  { %1849 = vmatprep.subr.bf16.mxu1 %v1848_v6 }
 0xa37   :  { %1851 = vmatpush3.bf16.msra.mxu1 %v1848_v6 }
 0xa3b   :  { %v1971_v18 = vpop.eup %1970 }
 0xa3c   :  { %v806_v20 = vmul.f32 %v1971_v18, %v774_v30  ;;  %v1973_v39 = vpop.eup %1972 }
 0xa3d   :  { %v807_v49 = vmul.f32 %v1973_v39, %v2374_v29 }
 0xa3e   :  { %v814_v25 = vmul.f32 %v813_v16, %v806_v20 }
 0xa3f   :  { %v815_v7 = vmul.f32 %v813_v16, %v807_v49 }
 0xa40   :  { %v822_v32 = vadd.f32 %v821_v22, %v814_v25  ;;  %1934 = vrot.lane.b32.xlu1 %v1933_v24, %s2143_s20 }
 0xa41   :  { %v823_v59 = vadd.f32 %v821_v22, %v815_v7 }
 0xa42   :  { %1775 = vmatprep.mubr.msk.f32.mxu1 %vm102_vm0, %v822_v32 }
 0xa46   :  { %1939 = vrot.lane.b32.xlu0 %v1938_v33, %s2143_s20 }
 0xabc   :  { %v793_v36 = vpop.xlane.xlu1 %792 }
 0xabd   :  { %v797_v30 = vmul.f32 0.03125, %v793_v36  ;;  %v790_v38 = vpop.xlane.xlu0 %789 }
 0xabe   :  { %v796_v41 = vmul.f32 0.03125, %v790_v38 }
 0xabf   :  { %v801_v9 = vadd.f32 1e-05, %v797_v30 }
 0xac0   :  { %v800_v19 = vadd.f32 1e-05, %v796_v41  ;;  %v1935_v48 = vpop.permute.xlu1 %1934 }
 0xac1   :  { %1974 = vrsqrt.f32 %v801_v9  ;;  %v1937_v50 = vunpack.i.h.bf16 %v1935_v48  ;;  %v1936_v51 = vunpack.i.l.bf16 %v1935_v48  ;;  %v1940_v8 = vpop.permute.xlu0 %1939 }
 0xac2   :  { %1976 = vrsqrt.f32 %v800_v19  ;;  %v1942_v12 = vunpack.i.h.bf16 %v1940_v8  ;;  %v1941_v55 = vunpack.i.l.bf16 %v1940_v8 }
 0xac3   :  { %v849_v54 = vsel %vm846_vm12, %v1936_v51, %v1937_v50 }
 0xac4   :  { %v850_v56 = vsel %vm846_vm12, %v1941_v55, %v1942_v12 }
 0xac5   :  { %v1852_v58 = vpack.c.bf16 %v850_v56, %v849_v54 }
 0xac7   :  { %1853 = vmatprep.subr.bf16.mxu1 %v1852_v58 }
 0xac8   :  { %1855 = vmatpush3.bf16.msra.mxu1 %v1852_v58 }
 0xacb   :  { %v1975_v60 = vpop.eup %1974  ;;  %1776 = vmatmul.mubr.msk.f32.vlgmr.msra.gmra.mrb[6].mxu1 %vm102_vm0, %v823_v59 }
 0xacc   :  { %v1977_v29 = vpop.eup %1976  ;;  %v809_v61 = vmul.f32 %v1975_v60, %v2392_v52  ;;  %v2425_v52 = vpack.i.bf16 %v2382_v40, %v2386_v46 }
 0xacd   :  { %v808_v62 = vmul.f32 %v1977_v29, %v2394_v53 }
 0xace   :  { %v817_v63 = vmul.f32 %v813_v16, %v809_v61 }
 0xacf   :  { %v816_v0 = vmul.f32 %v813_v16, %v808_v62 }
 0xad0   :  { %v825_v3 = vadd.f32 %v821_v22, %v817_v63 }
 0xad1   :  { %v824_v1 = vadd.f32 %v821_v22, %v816_v0 }
 0xad3   :  { %1778 = vmatprep.mubr.msk.f32.mxu1 %vm102_vm0, %v824_v1 }
 0xad4   :  { %1779 = vmatmul.mubr.msk.f32.gmra.mrb[8].mxu1 %vm102_vm0, %v825_v3 }
 0xb9e   :  { %v1777_v4 = vpop.f32.mrb[6].mxu1 }
 0xb9f   :  { %958 = vrot.lane.b32.xlu0 %v1777_v4, %s2144_s21  ;;  %v933_v5 = vpop.f32.mrb[7].mxu1 }
 0xba0   :  { %956 = vrot.lane.b32.xlu1 %v933_v5, %s2144_s21 }
 0xba7   :  { %v1780_v6 = vpop.f32.mrb[8].mxu1 }
 0xba8   :  { %962 = vrot.lane.b32.xlu0 %v1780_v6, %s2144_s21  ;;  %v943_v11 = vpop.f32.mrb[9].mxu1 }
 0xba9   :  { %960 = vrot.lane.b32.xlu1 %v943_v11, %s2144_s21 }
 0xbac   :  { %1949 = vrot.lane.b32.xlu0 %v2421_v14, %s2145_s22 }
 0xbad   :  { %1944 = vrot.lane.b32.xlu1 %v2425_v52, %s2145_s22 }
 0xc11   :  { %v959_v53 = vpop.permute.xlu0 %958 }
 0xc12   :  { %v969_v16 = vadd.f32 %v959_v53, %v2286_v42  ;;  %v957_v18 = vpop.permute.xlu1 %956 }
 0xc13   :  { %v968_v20 = vadd.f32 %v957_v18, %v2286_v42 }
 0xc14   :  { %v973_v22 = vmul.f32 %v969_v16, %v969_v16 }
 0xc15   :  { %v972_v24 = vmul.f32 %v968_v20, %v968_v20 }
 0xc16   :  { %v977_v15 = vmul.f32 %v973_v22, %v969_v16 }
 0xc17   :  { %v976_v25 = vmul.f32 %v972_v24, %v968_v20 }
 0xc18   :  { %v981_v31 = vmul.f32 0.044715, %v977_v15 }
 0xc19   :  { %v980_v32 = vmul.f32 0.044715, %v976_v25 }
 0xc1a   :  { %v985_v33 = vadd.f32 %v981_v31, %v969_v16  ;;  %v963_v40 = vpop.permute.xlu0 %962 }
 0xc1b   :  { %v984_v46 = vadd.f32 %v980_v32, %v968_v20  ;;  %v971_v34 = vadd.f32 %v963_v40, %v2286_v42  ;;  %v961_v35 = vpop.permute.xlu1 %960 }
 0xc1c   :  { %v989_v36 = vmul.f32 0.7978846, %v985_v33  ;;  %v970_v30 = vadd.f32 %v961_v35, %v2286_v42 }
 0xc1d   :  { %v988_v38 = vmul.f32 0.7978846, %v984_v46  ;;  %v975_v39 = vmul.f32 %v971_v34, %v971_v34 }
 0xc1e   :  { %v974_v41 = vmul.f32 %v970_v30, %v970_v30  ;;  %1978 = vtanh.f32 %v989_v36  ;;  %v1950_v9 = vpop.permute.xlu0 %1949 }
 0xc1f   :  { %v979_v19 = vmul.f32 %v975_v39, %v971_v34  ;;  %1980 = vtanh.f32 %v988_v38  ;;  %v1945_v48 = vpop.permute.xlu1 %1944  ;;  %v1952_v49 = vunpack.i.h.bf16 %v1950_v9  ;;  %v1951_v50 = vunpack.i.l.bf16 %v1950_v9 }
 0xc20   :  { %v978_v51 = vmul.f32 %v974_v41, %v970_v30  ;;  %v1947_v8 = vunpack.i.h.bf16 %v1945_v48  ;;  %v1946_v12 = vunpack.i.l.bf16 %v1945_v48 }
 0xc21   :  { %v983_v55 = vmul.f32 0.044715, %v979_v19  ;;  %v1860_v58 = vpack.c.bf16 %v1952_v49, %v1951_v50 }
 0xc22   :  { %v982_v54 = vmul.f32 0.044715, %v978_v51  ;;  %v1856_v56 = vpack.c.bf16 %v1947_v8, %v1946_v12 }
 0xc23   :  { %v987_v7 = vadd.f32 %v983_v55, %v971_v34 }
 0xc24   :  { %v986_v59 = vadd.f32 %v982_v54, %v970_v30  ;;  %1857 = vmatprep.subr.bf16.mxu0 %v1856_v56 }
 0xc25   :  { %v991_v60 = vmul.f32 0.7978846, %v987_v7  ;;  %1859 = vmatpush3.bf16.msra.mxu0 %v1856_v56 }
 0xc26   :  { %v990_v29 = vmul.f32 0.7978846, %v986_v59  ;;  %1861 = vmatprep.subr.bf16.mxu0 %v1860_v58 }
 0xc27   :  { %1982 = vtanh.f32 %v991_v60 }
 0xc28   :  { %v1979_v61 = vpop.eup %1978  ;;  %1984 = vtanh.f32 %v990_v29 }
 0xc29   :  { %v1981_v62 = vpop.eup %1980  ;;  %v997_v63 = vadd.f32 1.0, %v1979_v61  ;;  %1863 = vmatpush3.bf16.msra.mxu0 %v1860_v58 }
 0xc2a   :  { %v996_v0 = vadd.f32 1.0, %v1981_v62 }
 0xc2b   :  { %v1001_v1 = vmul.f32 0.5, %v997_v63 }
 0xc2c   :  { %v1000_v3 = vmul.f32 0.5, %v996_v0 }
 0xc2d   :  { %v1005_v4 = vmul.f32 %v1001_v1, %v969_v16 }
 0xc2e   :  { %v1004_v5 = vmul.f32 %v1000_v3, %v968_v20 }
 0xc2f   :  { %1018 = vrot.lane.b32.xlu0 %v1005_v4, %s2146_s23 }
 0xc30   :  { %1016 = vrot.lane.b32.xlu1 %v1004_v5, %s2146_s23 }
 0xc31   :  { %v1983_v6 = vpop.eup %1982 }
 0xc32   :  { %v1985_v11 = vpop.eup %1984  ;;  %v999_v53 = vadd.f32 1.0, %v1983_v6 }
 0xc33   :  { %v998_v18 = vadd.f32 1.0, %v1985_v11 }
 0xc34   :  { %v1003_v22 = vmul.f32 0.5, %v999_v53 }
 0xc35   :  { %v1002_v24 = vmul.f32 0.5, %v998_v18 }
 0xc36   :  { %v1007_v15 = vmul.f32 %v1003_v22, %v971_v34 }
 0xc37   :  { %v1006_v25 = vmul.f32 %v1002_v24, %v970_v30  ;;  %v1010_v30 = vsub.s32 7, %v2272_v21 }
 0xc38   :  { %1022 = vrot.lane.b32.xlu0 %v1007_v15, %s2146_s23 }
 0xc39   :  { %1020 = vrot.lane.b32.xlu1 %v1006_v25, %s2146_s23  ;;  %v1011_v38 = vrot.slane %v2275_v23, %v1010_v30 }
 0xc3c   :  { %1959 = vrot.lane.b32.xlu0 %v2421_v14, %s2147_s24 }
 0xc3d   :  { %1954 = vrot.lane.b32.xlu1 %v2425_v52, %s2147_s24 }
 0xca1   :  { %v1019_v20 = vpop.permute.xlu0 %1018 }
 0xca2   :  { %v1017_v16 = vpop.permute.xlu1 %1016 }
 0xca3   :  { %1789 = vmatprep.mubr.msk.f32.mxu0 %vm102_vm0, %v1017_v16 }
 0xca4   :  { %1790 = vmatmul.mubr.msk.f32.vlgmr.msra.gmra.mrb[8].mxu0 %vm102_vm0, %v1019_v20 }
 0xcaa   :  { %v1023_v32 = vpop.permute.xlu0 %1022 }
 0xcab   :  { %v1021_v31 = vpop.permute.xlu1 %1020 }
 0xcac   :  { %1792 = vmatprep.mubr.msk.f32.mxu0 %vm102_vm0, %v1021_v31 }
 0xcad   :  { %1793 = vmatmul.mubr.msk.f32.gmra.mrb[10].mxu0 %vm102_vm0, %v1023_v32 }
 0xcae   :  { %1438 = vmatprep.mubr.f32.mxu0 %v2140_v13  ;;  %v1960_v34 = vpop.permute.xlu0 %1959 }
 0xcaf   :  { %v1955_v33 = vpop.permute.xlu1 %1954  ;;  %v1962_v52 = vunpack.i.h.bf16 %v1960_v34  ;;  %v1961_v35 = vunpack.i.l.bf16 %v1960_v34  ;;  %v1644_v34 = vld [vmem:[#allocation5 + $0x8] ss:$0 sm:$0xff] }
 0xcb0   :  { %v1957_v40 = vunpack.i.h.bf16 %v1955_v33  ;;  %v1956_v46 = vunpack.i.l.bf16 %v1955_v33 }
 0xcb1   :  { %v1868_v36 = vpack.c.bf16 %v1962_v52, %v1961_v35 }
 0xcb2   :  { %v1864_v14 = vpack.c.bf16 %v1957_v40, %v1956_v46 }
 0xcb4   :  { %1865 = vmatprep.subr.bf16.mxu1 %v1864_v14 }
 0xcb5   :  { %1867 = vmatpush3.bf16.msra.mxu1 %v1864_v14 }
 0xcb6   :  { %1869 = vmatprep.subr.bf16.mxu1 %v1868_v36 }
 0xcb9   :  { %1871 = vmatpush3.bf16.msra.mxu1 %v1868_v36 }
 0xd77   :  { %v1791_v39 = vpop.f32.mrb[8].mxu0 }
 0xd78   :  { %v1116_v41 = vadd.f32 %v1791_v39, %v1011_v38  ;;  %v1110_v9 = vpop.f32.mrb[9].mxu0 }
 0xd79   :  { %v1111_v19 = vadd.f32 %v1110_v9, %v1011_v38 }
 0xd7a   :  { %v1130_v48 = vmul.f32 %v1116_v41, %v1116_v41 }
 0xd7b   :  { %v1129_v49 = vmul.f32 %v1111_v19, %v1111_v19 }
 0xd7c   :  { %v1134_v50 = vmul.f32 %v1130_v48, %v1116_v41 }
 0xd7d   :  { %v1133_v51 = vmul.f32 %v1129_v49, %v1111_v19 }
 0xd7e   :  { %v1138_v8 = vmul.f32 0.044715, %v1134_v50 }
 0xd7f   :  { %v1137_v12 = vmul.f32 0.044715, %v1133_v51  ;;  %v2148_v51 = vmov 64  }
 0xd80   :  { %v1142_v55 = vadd.f32 %v1138_v8, %v1116_v41  ;;  %v1794_v54 = vpop.f32.mrb[10].mxu0  ;;  %1963 = vset.pattern.permute.xlu0 %v2148_v51 }
 0xd81   :  { %v1141_v56 = vadd.f32 %v1137_v12, %v1111_v19  ;;  %v1126_v58 = vadd.f32 %v1794_v54, %v1011_v38  ;;  %v1120_v7 = vpop.f32.mrb[11].mxu0 }
 0xd82   :  { %v1146_v59 = vmul.f32 0.7978846, %v1142_v55  ;;  %v1121_v60 = vadd.f32 %v1120_v7, %v1011_v38 }
 0xd83   :  { %v1145_v21 = vmul.f32 0.7978846, %v1141_v56  ;;  %v1132_v29 = vmul.f32 %v1126_v58, %v1126_v58 }
 0xd84   :  { %1986 = vtanh.f32 %v1146_v59  ;;  %v1131_v23 = vmul.f32 %v1121_v60, %v1121_v60 }
 0xd85   :  { %1988 = vtanh.f32 %v1145_v21  ;;  %v1136_v61 = vmul.f32 %v1132_v29, %v1126_v58 }
 0xd86   :  { %v1135_v62 = vmul.f32 %v1131_v23, %v1121_v60 }
 0xd87   :  { %v1140_v63 = vmul.f32 0.044715, %v1136_v61 }
 0xd88   :  { %v1139_v0 = vmul.f32 0.044715, %v1135_v62 }
 0xd89   :  { %v1144_v1 = vadd.f32 %v1140_v63, %v1126_v58 }
 0xd8a   :  { %v1143_v3 = vadd.f32 %v1139_v0, %v1121_v60 }
 0xd8b   :  { %v1148_v4 = vmul.f32 0.7978846, %v1144_v1 }
 0xd8c   :  { %v1147_v5 = vmul.f32 0.7978846, %v1143_v3 }
 0xd8d   :  { %1990 = vtanh.f32 %v1148_v4 }
 0xd8e   :  { %v1987_v6 = vpop.eup %1986  ;;  %1992 = vtanh.f32 %v1147_v5 }
 0xd8f   :  { %v1989_v11 = vpop.eup %1988  ;;  %v1154_v53 = vadd.f32 1.0, %v1987_v6  ;;  %v1344_v6 = vrot.slane %v2299_v26, 4 }
 0xd90   :  { %v1153_v18 = vadd.f32 1.0, %v1989_v11  ;;  %v2483_v11 = vld [vmem:[#allocation8 + $0x60] sm:$0x1f] }
 0xd91   :  { %v1158_v22 = vmul.f32 0.5, %v1154_v53  ;;  %v1341_v53 = vrot.slane %v2303_v27, 4  ;;  %vm404_vm14 = vcmp.ge.f32.partialorder %v2483_v11, 0.0 }
 0xd92   :  { %v1157_v24 = vmul.f32 0.5, %v1153_v18  ;;  %v1347_v18 = vrot.slane %v2316_v10, 4 }
 0xd93   :  { %v1162_v25 = vmul.f32 %v1158_v22, %v1116_v41  ;;  %v1350_v22 = vrot.slane %v2483_v11, 4 }
 0xd94   :  { %v1161_v15 = vmul.f32 %v1157_v24, %v1111_v19  ;;  %v96_v24 = vld [vmem:[#allocation8 + $0x50] sm:$0xff] }
 0xd96   :  { %1803 = vmatprep.mubr.msk.f32.mxu1 %vm102_vm0, %v1161_v15  ;;  %v2488_v15 = vld [vmem:[#allocation8 + $0x68] sm:$0x1f] }
 0xd97   :  { %v1991_v16 = vpop.eup %1990  ;;  %1804 = vmatmul.mubr.msk.f32.vlgmr.msra.gmra.mrb[10].mxu1 %vm102_vm0, %v1162_v25  ;;  %v1345_v25 = vrot.slane %v96_v24, 4  ;;  %vm405_vm15 = vcmp.ge.f32.partialorder %v2488_v15, 0.0 }
 0xd98   :  { %v1993_v20 = vpop.eup %1992  ;;  %v1156_v31 = vadd.f32 1.0, %v1991_v16  ;;  %v1352_v16 = vrot.slane %v2488_v15, 4 }
 0xd99   :  { %v1155_v32 = vadd.f32 1.0, %v1993_v20  ;;  %v95_v20 = vld [vmem:[#allocation8 + $0x48] sm:$0xff]  ;;  %v1346_v27 = vsel %vm411_vm2, %v1344_v6, %v1345_v25  ;;  %v1624_v6 = vadd.f32 -2.7725887, %v2331_v43 }
 0xd9a   :  { %v1160_v33 = vmul.f32 0.5, %v1156_v31  ;;  %v97_v31 = vld [vmem:[#allocation8 + $0x58] sm:$0xff]  ;;  %v1353_v10 = vsel %vm411_vm2, %v1345_v25, %v1352_v16  ;;  %v1626_v16 = vadd.f32 -2.7725887, %v2335_v45 }
 0xd9b   :  { %v1159_v40 = vmul.f32 0.5, %v1155_v32  ;;  %v2491_v32 = vld [vmem:[#allocation8 + $0x70] sm:$0x1f]  ;;  %v1348_v26 = vrot.slane %v97_v31, 4 }
 0xd9c   :  { %v1164_v14 = vmul.f32 %v1160_v33, %v1126_v58  ;;  %v1342_v33 = vrot.slane %v95_v20, 4  ;;  %v1559_v25 = vrot.slane %v2491_v32, %v2309_v28 }
 0xd9d   :  { %v1163_v46 = vmul.f32 %v1159_v40, %v1121_v60  ;;  %v1354_v40 = vrot.slane %v2491_v32, 4 }
 0xd9e   :  { %vm1562_vm7 = vcmp.eq.f32.partialorder %v1559_v25, %v2337_v47  ;;  %vm1571_vm8 = vcmp.eq.f32.partialorder %v1559_v25, %v2348_v57 }
 0xd9f   :  { %1806 = vmatprep.mubr.msk.f32.mxu1 %vm102_vm0, %v1163_v46  ;;  %v1872_v46 = vpack.c.bf16 %v1353_v10, %v1346_v27 }
 0xda0   :  { %1807 = vmatmul.mubr.msk.f32.gmra.mrb[12].mxu1 %vm102_vm0, %v1164_v14  ;;  %v1343_v14 = vsel %vm411_vm2, %v1341_v53, %v1342_v33  ;;  %vm406_vm0 = vcmp.ge.f32.partialorder %v2491_v32, 0.0 }
 0xda1   :  { %1873 = vmatprep.subr.bf16.mxu0 %v1872_v46 }
 0xe6a   :  { %v1805_v52 = vpop.f32.mrb[10].mxu1 }
 0xe6b   :  { %v2446_v35 = vadd.f32 %v1805_v52, %v1644_v34  ;;  %v1259_v36 = vpop.f32.mrb[11].mxu1  ;;  %v1349_v52 = vsel %vm411_vm2, %v1347_v18, %v1348_v26  ;;  %v1555_v18 = vrot.slane %v2488_v15, %v2309_v28 }
 0xe6c   :  { %v2448_v30 = vadd.f32 %v1644_v34, %v1259_v36 }
 0xe6d   :  { %v1282_v38 = vsel %vm1278_vm13, %v2446_v35, -inf  ;;  %vm1561_vm6 = vcmp.eq.f32.partialorder %v1555_v18, %v2337_v47  ;;  %vm1570_vm10 = vcmp.eq.f32.partialorder %v1555_v18, %v2348_v57  ;;  %vm1579_vm12 = vcmp.eq.f32.partialorder %v1555_v18, %v2357_v2 }
 0xe6e   :  { %1283 = vmax.xlane.f32.xlu0 %v1282_v38  ;;  %v1279_v39 = vsel %vm1278_vm13, %v2448_v30, -inf  ;;  %v1355_v38 = vsel %vm411_vm2, %v1348_v26, %v1354_v40 }
 0xe6f   :  { %1280 = vmax.xlane.f32.xlu1 %v1279_v39  ;;  %v1876_v39 = vpack.c.bf16 %v1355_v38, %v1349_v52 }
 0xe71   :  { %1877 = vmatprep.subr.bf16.mxu1 %v1876_v39 }
 0xe72   :  { %1879 = vmatpush3.bf16.msra.mxu1 %v1876_v39 }
 0xe73   :  { %v1808_v41 = vpop.f32.mrb[12].mxu1 }
 0xe74   :  { %v2454_v9 = vadd.f32 %v1808_v41, %v1644_v34  ;;  %v1269_v19 = vpop.f32.mrb[13].mxu1 }
 0xe75   :  { %v2456_v48 = vadd.f32 %v1644_v34, %v1269_v19  ;;  %v1351_v34 = vsel %vm411_vm2, %v1342_v33, %v1350_v22  ;;  %v1625_v22 = vadd.f32 -2.7725887, %v2333_v44  ;;  %vm590_vm2 = vcmp.eq.s32.totalorder %v2324_v37, 0 }
 0xe76   :  { %v1288_v49 = vsel %vm1278_vm13, %v2454_v9, -inf  ;;  %v1874_v36 = vpack.c.bf16 %v1351_v34, %v1343_v14 }
 0xe77   :  { %1289 = vmax.xlane.f32.xlu1 %v1288_v49  ;;  %v1285_v50 = vsel %vm1278_vm13, %v2456_v48, -inf }
 0xe78   :  { %1286 = vmax.xlane.f32.xlu0 %v1285_v50  ;;  %1875 = vmatpush1.bf16.msra.mxu0 %v1874_v36 }
 0xefb   :  { %v2462_v8 = vpop.xlane.xlu0 %1283 }
 0xefc   :  { %v1292_v12 = vsub.f32 %v2446_v35, %v2462_v8  ;;  %v2466_v55 = vpop.xlane.xlu1 %1280 }
 0xefd   :  { %v1291_v54 = vsub.f32 %v2448_v30, %v2466_v55 }
 0xefe   :  { %v1297_v56 = vmul.f32 1.442695, %v1292_v12 }
 0xeff   :  { %v1295_v58 = vmul.f32 1.442695, %v1291_v54 }
 0xf00   :  { %1994 = vpow2.f32 %v1297_v56 }
 0xf01   :  { %1996 = vpow2.f32 %v1295_v58 }
 0xf04   :  { %v2470_v7 = vpop.xlane.xlu1 %1289 }
 0xf05   :  { %v1294_v59 = vsub.f32 %v2454_v9, %v2470_v7  ;;  %v2474_v60 = vpop.xlane.xlu0 %1286 }
 0xf06   :  { %v1293_v21 = vsub.f32 %v2456_v48, %v2474_v60 }
 0xf07   :  { %v1301_v29 = vmul.f32 1.442695, %v1294_v59 }
 0xf08   :  { %v1299_v23 = vmul.f32 1.442695, %v1293_v21 }
 0xf09   :  { %1998 = vpow2.f32 %v1301_v29 }
 0xf0a   :  { %v1995_v61 = vpop.eup %1994  ;;  %2000 = vpow2.f32 %v1299_v23 }
 0xf0b   :  { %v1997_v62 = vpop.eup %1996  ;;  %v1306_v63 = vsel %vm1278_vm13, %v1995_v61, 0.0 }
 0xf0c   :  { %1307 = vadd.xlane.f32.xlu1 %v1306_v63  ;;  %v1303_v0 = vsel %vm1278_vm13, %v1997_v62, 0.0 }
 0xf0d   :  { %1304 = vadd.xlane.f32.xlu0 %v1303_v0 }
 0xf13   :  { %v1999_v1 = vpop.eup %1998 }
 0xf14   :  { %v2001_v3 = vpop.eup %2000  ;;  %v1312_v4 = vsel %vm1278_vm13, %v1999_v1, 0.0 }
 0xf15   :  { %1313 = vadd.xlane.f32.xlu1 %v1312_v4  ;;  %v1309_v5 = vsel %vm1278_vm13, %v2001_v3, 0.0 }
 0xf16   :  { %1310 = vadd.xlane.f32.xlu0 %v1309_v5 }
 0xf2c   :  { %601 = vperm.xlu0 %1963, %v2286_v42  }
 0xf99   :  { %v1308_v41 = vpop.xlane.xlu1 %1307 }
 0xf9a   :  { %2002 = vlog2.f32 %v1308_v41  ;;  %v1305_v19 = vpop.xlane.xlu0 %1304 }
 0xf9b   :  { %2004 = vlog2.f32 %v1305_v19 }
 0xfa2   :  { %v1314_v49 = vpop.xlane.xlu1 %1313 }
 0xfa3   :  { %2006 = vlog2.f32 %v1314_v49  ;;  %v1311_v50 = vpop.xlane.xlu0 %1310 }
 0xfa4   :  { %v2003_v51 = vpop.eup %2002  ;;  %2008 = vlog2.f32 %v1311_v50 }
 0xfa5   :  { %v2005_v12 = vpop.eup %2004  ;;  %v1318_v54 = vmul.f32 0.6931472, %v2003_v51 }
 0xfa6   :  { %v1316_v56 = vmul.f32 0.6931472, %v2005_v12 }
 0xfa7   :  { %v1324_v58 = vadd.f32 %v1318_v54, %v2462_v8 }
 0xfa8   :  { %v1323_v59 = vadd.f32 %v1316_v56, %v2466_v55 }
 0xfa9   :  { %v1328_v42 = vsub.f32 %v2446_v35, %v1324_v58 }
 0xfaa   :  { %v1327_v21 = vsub.f32 %v2448_v30, %v1323_v59 }
 0xfab   :  { %v1332_v61 = vadd.f32 2.7725887, %v1328_v42  ;;  %v602_v24 = vpop.permute.xlu0 %601 }
 0xfac   :  { %v1331_v29 = vadd.f32 2.7725887, %v1327_v21 }
 0xfad   :  { %v2007_v23 = vpop.eup %2006 }
 0xfae   :  { %v2009_v62 = vpop.eup %2008  ;;  %v1322_v63 = vmul.f32 0.6931472, %v2007_v23  ;;  %1649 = vmatmul.mubr.msk.f32.vlgmr.msra.gmra.mrb[12].mxu0 %vm1278_vm13, %v1331_v29  ;;  %1813 = vmatprep.mubr.msk.f32.mxu1 %vm1278_vm13, %v1331_v29 }
 0xfaf   :  { %v1320_v0 = vmul.f32 0.6931472, %v2009_v62  ;;  %1814 = vmatmul.mubr.msk.f32.vlgmr.msra.gmra.mrb[14].mxu1 %vm1278_vm13, %v1332_v61  ;;  %1444 = vmatprep.mubr.f32.mxu0 %v2140_v13 }
 0xfb0   :  { %v1326_v8 = vadd.f32 %v1322_v63, %v2470_v7 }
 0xfb1   :  { %v1325_v35 = vadd.f32 %v1320_v0, %v2474_v60 }
 0xfb2   :  { %v1330_v30 = vsub.f32 %v2454_v9, %v1326_v8  ;;  %1650 = vmatmul.mubr.msk.f32.gmra.mrb[14].mxu0 %vm1278_vm13, %v1332_v61  ;;  %v2149_v9 = vmov 0  }
 0xfb3   :  { %v1329_v55 = vsub.f32 %v2456_v48, %v1325_v35  ;;  %1450 = vmatprep.mubr.f32.mxu0 %v2140_v13  ;;  %v565_v48 = vsel %vm404_vm14, 1, %v2149_v9  ;;  %v566_v7 = vsel %vm405_vm15, 1, %v2149_v9  ;;  %v567_v4 = vsel %vm406_vm0, 1, %v2149_v9 }
 0xfb4   :  { %v1334_v3 = vadd.f32 2.7725887, %v1330_v30  ;;  %v571_v60 = vrot.slane %v565_v48, %v2309_v28  ;;  %v575_v5 = vrot.slane %v566_v7, %v2309_v28  ;;  %v579_v53 = vrot.slane %v567_v4, %v2309_v28 }
 0xfb5   :  { %v1333_v1 = vadd.f32 2.7725887, %v1329_v55  ;;  %vm1580_vm14 = vcmp.eq.f32.partialorder %v1559_v25, %v2357_v2  ;;  %vm1588_vm0 = vcmp.eq.f32.partialorder %v1555_v18, %v2368_v17 }
 0xfb6   :  { %vm580_vm1 = vcmp.eq.s32.totalorder %v571_v60, 1  ;;  %vm581_vm3 = vcmp.eq.s32.totalorder %v575_v5, 1  ;;  %vm582_vm5 = vcmp.eq.s32.totalorder %v579_v53, 1 }
 0xfb7   :  { %1651 = vmatmul.mubr.msk.f32.gmra.mrb[16].mxu0 %vm1278_vm13, %v1333_v1  ;;  %1816 = vmatprep.mubr.msk.f32.mxu1 %vm1278_vm13, %v1333_v1  ;;  %v583_v43 = vsel %vm580_vm1, %v1624_v6, 0.0  ;;  %v584_v37 = vsel %vm581_vm3, %v1625_v22, 0.0  ;;  %v585_v45 = vsel %vm582_vm5, %v1626_v16, 0.0 }
 0xfb8   :  { %1817 = vmatmul.mubr.msk.f32.gmra.mrb[16].mxu1 %vm1278_vm13, %v1334_v3  ;;  %1456 = vmatprep.mubr.f32.mxu0 %v2140_v13  ;;  %v1551_v13 = vrot.slane %v2483_v11, %v2309_v28  ;;  %v604_v11 = vsel %vm590_vm2, %v602_v24, %v583_v43 }
 0xfba   :  { %vm1560_vm4 = vcmp.eq.f32.partialorder %v1551_v13, %v2337_v47  ;;  %vm1569_vm9 = vcmp.eq.f32.partialorder %v1551_v13, %v2348_v57  ;;  %vm1578_vm11 = vcmp.eq.f32.partialorder %v1551_v13, %v2357_v2  ;;  %vm1587_vm15 = vcmp.eq.f32.partialorder %v1551_v13, %v2368_v17 }
 0xfbb   :  { %1652 = vmatmul.mubr.msk.f32.gmra.mrb[18].mxu0 %vm1278_vm13, %v1334_v3  ;;  %vm1589_vm13 = vcmp.eq.f32.partialorder %v1559_v25, %v2368_v17 }
0x1081   :  { %v1440_v20 = vpop.f32.mrb[12].mxu0 }
0x1082   :  { %v1563_v31 = vsel %vm1560_vm4, %v1440_v20, 0.0  ;;  %v1442_v33 = vpop.f32.mrb[13].mxu0  ;;  %v1815_v44 = vpop.f32.mrb[14].mxu1 }
0x1083   :  { %v1566_v15 = vadd.f32 %v1563_v31, %v604_v11  ;;  %v1564_v26 = vsel %vm1561_vm6, %v1442_v33, 0.0  ;;  %v1529_v40 = vpop.f32.mrb[15].mxu1  ;;  %v1574_v46 = vsel %vm1571_vm8, %v1815_v44, 0.0 }
0x1084   :  { %v1567_v28 = vadd.f32 %v1564_v26, %v584_v37  ;;  %v1565_v32 = vsel %vm1562_vm7, %v1529_v40, 0.0 }
0x1085   :  { %v1568_v27 = vadd.f32 %v1565_v32, %v585_v45  ;;  %v1446_v10 = vpop.f32.mrb[14].mxu0 }
0x1086   :  { %v1572_v14 = vsel %vm1569_vm9, %v1446_v10, 0.0  ;;  %v1448_v34 = vpop.f32.mrb[15].mxu0 }
0x1087   :  { %v1575_v52 = vadd.f32 %v1572_v14, %v1566_v15  ;;  %v1573_v36 = vsel %vm1570_vm10, %v1448_v34, 0.0  ;;  %v1577_v38 = vadd.f32 %v1574_v46, %v1568_v27 }
0x1088   :  { %v1576_v39 = vadd.f32 %v1573_v36, %v1567_v28 }
0x108a   :  { %v1452_v41 = vpop.f32.mrb[16].mxu0 }
0x108b   :  { %v1581_v47 = vsel %vm1578_vm11, %v1452_v41, 0.0  ;;  %v1454_v19 = vpop.f32.mrb[17].mxu0  ;;  %v1818_v49 = vpop.f32.mrb[16].mxu1 }
0x108c   :  { %v1584_v50 = vadd.f32 %v1581_v47, %v1575_v52  ;;  %v1582_v51 = vsel %vm1579_vm12, %v1454_v19, 0.0  ;;  %v1592_v12 = vsel %vm1589_vm13, %v1818_v49, 0.0  ;;  %v1539_v54 = vpop.f32.mrb[17].mxu1 }
0x108d   :  { %v1585_v57 = vadd.f32 %v1582_v51, %v1576_v39  ;;  %v1583_v56 = vsel %vm1580_vm14, %v1539_v54, 0.0 }
0x108e   :  { %v1586_v58 = vadd.f32 %v1583_v56, %v1577_v38  ;;  %v1458_v59 = vpop.f32.mrb[18].mxu0 }
0x108f   :  { %v1590_v42 = vsel %vm1587_vm15, %v1458_v59, 0.0  ;;  %v1460_v21 = vpop.f32.mrb[19].mxu0 }
0x1090   :  { %v1595_v29 = vadd.f32 %v1592_v12, %v1586_v58  ;;  %v1593_v23 = vadd.f32 %v1590_v42, %v1584_v50  ;;  %v1591_v61 = vsel %vm1588_vm0, %v1460_v21, 0.0 }
0x1091   :  { %v1594_v62 = vadd.f32 %v1591_v61, %v1585_v57 }
0x1092   :  { %1598 = vst [vmem:[#allocation10 + $0x10] sm:$0xff] %v1595_v29  ;;  %1596 = vst [vmem:[#allocation10] sm:$0xff] %v1593_v23 }
0x1093   :  { %1597 = vst [vmem:[#allocation10 + $0x8] sm:$0xff] %v1594_v62 }
0x1094   :  { %2109 = shalt.err (!%p2106_p8)
}
0x1095   :  { %s2110_s7 = scalar_lea.hbm %s2565_s5, 384 }
0x1096   :  { %p2111_p9 = scmp.ne.s32.totalorder %s2565_s5, %s2110_s7  ;;  %p2114_p10 = scmp.lt.u32.totalorder %s2110_s7, %s2565_s5 }
0x1098   :  { %p2116_p11 = pnand %p2114_p10, %p2111_p9 }
0x109a   :  { %2119 = shalt.err (!%p2116_p11)
}
0x109b   :  { %1608 = dma.vmem_to_hbm [thread:$0]  %s1606_s26, 384, %s2565_s5, [#allocation4]  }
0x109c   :  { %2126 = dma.done.wait [#allocation4], 384  }
0x109d   :  { %2127 = vsyncadd [#allocation4], 4294966912 }
0x109e   :  { %1612 = vsyncpa [#allocation3], 1 }
0x109f   :  { %1613 = vsyncpa [#allocation6], 1 }
0x10a0   :  { %1614 = vsyncpa [#allocation9], 1 }
0x10a1   :  { %1615 = vsyncpa [#allocation4], 1 }

</bundles_post_ra>
